<compile_context>
chip_gen: v6e
topology: v6e:2x2x1
jax: 0.10.0
libtpu: 0.0.40
codegen_flags: <defaults>
</compile_context>

<pallas_src>
import math

import jax
import jax.numpy as jnp
from jax import lax
from jax.experimental import pallas as pl
from jax.experimental.pallas import tpu as pltpu

# ---- module config (small, lane-aligned: head_dim = 128) --------------------
HIDDEN = 256
NUM_HEADS = 2
HEAD_DIM = HIDDEN // NUM_HEADS          # 128
SEQ = 8
BATCH = 2
ROPE_BASE = 10000.0
SCALE = 1.0 / math.sqrt(HEAD_DIM)       # q_scaling = 1, norm_factor = sqrt(head_dim)


# ---------------------------------------------------------------------------
# Fused kernel: QKV proj + RoPE + causal attention + dense proj, single step.
# ---------------------------------------------------------------------------
def _qwen_attn_fused_kernel(hs_ref, wqkv_ref, bqkv_ref, wdense_ref, bdense_ref,
                            cos_ref, sin_ref, o_ref):
    x = hs_ref[...]                                 # [B*S, H] f32

    # --- QKV projection on the full slab: bf16 MXU operands, f32 accumulate --
    qkv = jnp.dot(x.astype(jnp.bfloat16), wqkv_ref[...],
                  preferred_element_type=jnp.float32) + bqkv_ref[...]   # [B*S, 3H]

    cos = cos_ref[...]       # [S, hd] f32
    sin_s = sin_ref[...]     # [S, hd] f32, sign-folded (-sin on first hd/2 lanes)
    wd = wdense_ref[...]     # [H, H] bf16
    bd = bdense_ref[...]     # [1, H] f32

    def rope(t):
        # rotate_half(t) = roll(t, hd/2) with the sign already folded into sin_s
        return t * cos + pltpu.roll(t, shift=HEAD_DIM // 2, axis=1) * sin_s

    # Causal additive bias, built ONCE (hoisted out of the batch/head unroll).
    qi = lax.broadcasted_iota(jnp.int32, (SEQ, SEQ), 0)
    kj = lax.broadcasted_iota(jnp.int32, (SEQ, SEQ), 1)
    causal_bias = jnp.where(kj <= qi, 0.0, -1e30).astype(jnp.float32)   # [S, S]

    for b in range(BATCH):                          # static unroll (B = 2)
        r0 = b * SEQ
        acc = jnp.zeros((SEQ, HIDDEN), dtype=jnp.float32)
        for h in range(NUM_HEADS):                  # static unroll (nh = 2)
            c0 = h * HEAD_DIM
            q = qkv[r0:r0 + SEQ, c0:c0 + HEAD_DIM]                       # [S, hd]
            k = qkv[r0:r0 + SEQ, HIDDEN + c0:HIDDEN + c0 + HEAD_DIM]
            v = qkv[r0:r0 + SEQ, 2 * HIDDEN + c0:2 * HIDDEN + c0 + HEAD_DIM]

            q = rope(q)
            k = rope(k)

            # scores = q k^T / sqrt(head_dim) + causal bias
            s = lax.dot_general(q.astype(jnp.bfloat16), k.astype(jnp.bfloat16),
                                (((1,), (1,)), ((), ())),
                                preferred_element_type=jnp.float32) * SCALE
            s = s + causal_bias                                          # [S, S]

            # softmax (f32 elementwise)
            m = jnp.max(s, axis=-1, keepdims=True)
            p = jnp.exp(s - m)
            denom = jnp.sum(p, axis=-1, keepdims=True)

            o = jnp.dot(p.astype(jnp.bfloat16), v.astype(jnp.bfloat16),
                        preferred_element_type=jnp.float32)              # [S, hd]
            ctx_h = o * pl.reciprocal(denom, approx=True)

            # Per-head dense accumulation (no concat of heads): MXU sums over
            # the K-slices of Wdense directly into the f32 accumulator.
            acc = acc + jnp.dot(ctx_h.astype(jnp.bfloat16),
                                wd[c0:c0 + HEAD_DIM, :],
                                preferred_element_type=jnp.float32)      # [S, H]

        o_ref[r0:r0 + SEQ, :] = acc + bd


def qwen_attention_forward(hidden_states, wqkv_bf16, bqkv_row, wdense_bf16,
                           bdense_row, cos, sin_signed):
    """hidden_states [B,S,H] f32; weights bf16; biases pre-shaped (1,N) f32."""
    B, S, H = hidden_states.shape
    hs_flat = hidden_states.reshape(B * S, H)       # collapse batch into M rows
    full2 = lambda i: (0, 0)
    out_flat = pl.pallas_call(
        _qwen_attn_fused_kernel,
        out_shape=jax.ShapeDtypeStruct((B * S, H), jnp.float32),
        grid=(1,),                                  # single fused step
        in_specs=[
            pl.BlockSpec((B * S, H), full2),        # hidden_states slab
            pl.BlockSpec((H, 3 * H), full2),        # Wqkv (bf16)
            pl.BlockSpec((1, 3 * H), full2),        # bqkv
            pl.BlockSpec((H, H), full2),            # Wdense (bf16)
            pl.BlockSpec((1, H), full2),            # bdense
            pl.BlockSpec((S, HEAD_DIM), full2),     # cos
            pl.BlockSpec((S, HEAD_DIM), full2),     # sin (sign-folded)
        ],
        out_specs=pl.BlockSpec((B * S, H), full2),
    )(hs_flat, wqkv_bf16, bqkv_row, wdense_bf16, bdense_row, cos, sin_signed)
    return out_flat.reshape(B, S, H)


# ---------------------------------------------------------------------------
# RoPE table (QWen convention, base 10000, no dynamic NTK at this seq length)
# ---------------------------------------------------------------------------
def make_rope_tables(seq, head_dim, base=ROPE_BASE):
    inv_freq = 1.0 / (base ** (jnp.arange(0, head_dim, 2, dtype=jnp.float32) / head_dim))
    pos = jnp.arange(seq, dtype=jnp.float32)
    freqs = jnp.einsum("s,d->sd", pos, inv_freq)          # [S, hd/2]
    emb = jnp.concatenate([freqs, freqs], axis=-1)        # [S, hd]
    return jnp.cos(emb), jnp.sin(emb)


def fold_rotate_half_sign(sin, head_dim):
    # rotate_half(x) = roll(x, hd/2) * sign ; fold sign into the sin table so
    # the kernel never builds the iota/where mask.
    col = jnp.arange(head_dim)
    sign = jnp.where(col < head_dim // 2, -1.0, 1.0).astype(jnp.float32)
    return sin * sign[None, :]


# ---------------------------------------------------------------------------
# Pure-JAX reference for a correctness check
# ---------------------------------------------------------------------------
def _rope_ref(x, cos, sin):
    d = x.shape[-1]
    x1, x2 = x[..., : d // 2], x[..., d // 2:]
    return x * cos + jnp.concatenate([-x2, x1], axis=-1) * sin


def ref_forward(hs, wqkv, bqkv, wdense, bdense, cos, sin):
    B, S, H = hs.shape
    hp = lax.Precision.HIGHEST
    qkv = jnp.einsum("bsh,hk->bsk", hs, wqkv, precision=hp) + bqkv
    q, k, v = jnp.split(qkv, 3, axis=-1)

    def sh(t):
        return t.reshape(B, S, NUM_HEADS, HEAD_DIM).transpose(0, 2, 1, 3)

    q, k, v = sh(q), sh(k), sh(v)
    q = _rope_ref(q, cos, sin)
    k = _rope_ref(k, cos, sin)
    s = jnp.einsum("bhqd,bhkd->bhqk", q, k, precision=hp) * SCALE
    mask = jnp.tril(jnp.ones((S, S), dtype=bool))
    s = jnp.where(mask, s, -1e30)
    p = jax.nn.softmax(s, axis=-1)
    o = jnp.einsum("bhqk,bhkd->bhqd", p, v, precision=hp)
    o = o.transpose(0, 2, 1, 3).reshape(B, S, H)
    return (jnp.einsum("bsh,hk->bsk", o.reshape(B, S, H), wdense, precision=hp)
            + bdense)


# ---------------------------------------------------------------------------
if __name__ == "__main__":
    key = jax.random.PRNGKey(0)
    k0, k1, k2, k3, k4 = jax.random.split(key, 5)

    hidden_states = jax.random.normal(k0, (BATCH, SEQ, HIDDEN), dtype=jnp.float32)
    wqkv = jax.random.normal(k1, (HIDDEN, 3 * HIDDEN), dtype=jnp.float32) * 0.02
    bqkv = jax.random.normal(k2, (3 * HIDDEN,), dtype=jnp.float32) * 0.02
    wdense = jax.random.normal(k3, (HIDDEN, HIDDEN), dtype=jnp.float32) * 0.02
    bdense = jax.random.normal(k4, (HIDDEN,), dtype=jnp.float32) * 0.02

    cos, sin = make_rope_tables(SEQ, HEAD_DIM)
    sin_signed = fold_rotate_half_sign(sin, HEAD_DIM)

    # One-time prep: bf16 weights (halve DMA bytes, native MXU dtype),
    # biases pre-shaped to (1, N) rows.
    wqkv_bf16 = wqkv.astype(jnp.bfloat16)
    wdense_bf16 = wdense.astype(jnp.bfloat16)
    bqkv_row = bqkv.reshape(1, -1)
    bdense_row = bdense.reshape(1, -1)

    out = qwen_attention_forward(hidden_states, wqkv_bf16, bqkv_row,
                                 wdense_bf16, bdense_row, cos, sin_signed)
    out = jax.block_until_ready(out)

    ref = ref_forward(hidden_states, wqkv, bqkv, wdense, bdense, cos, sin)
    assert out.shape == (BATCH, SEQ, HIDDEN)
    assert jnp.allclose(out, ref, rtol=2e-2, atol=2e-2), (
        float(jnp.max(jnp.abs(out - ref)))
    )
    print("KERNEL_OK")
</pallas_src>

<mosaic_0001>
module attributes {stable_mosaic.version = 11 : i64} {
  func.func @_qwen_attn_fused_kernel(%arg0: i32, %arg1: memref<16x256xf32, #tpu.memory_space<vmem>>, %arg2: memref<256x768xbf16, #tpu.memory_space<vmem>>, %arg3: memref<1x768xf32, #tpu.memory_space<vmem>>, %arg4: memref<256x256xbf16, #tpu.memory_space<vmem>>, %arg5: memref<1x256xf32, #tpu.memory_space<vmem>>, %arg6: memref<8x128xf32, #tpu.memory_space<vmem>>, %arg7: memref<8x128xf32, #tpu.memory_space<vmem>>, %arg8: memref<16x256xf32, #tpu.memory_space<vmem>>) attributes {dimension_semantics = [#tpu.dimension_semantics<arbitrary>], iteration_bounds = array<i64: 1>, scalar_prefetch = 0 : i64, scratch_operands = 0 : i64, tpu.core_type = #tpu.core_type<tc>, window_params = [{pipeline_mode = #tpu.pipeline_mode<synchronous>, transform_indices = @transform_0, window_bounds = array<i64: 16, 256>}, {pipeline_mode = #tpu.pipeline_mode<synchronous>, transform_indices = @transform_1, window_bounds = array<i64: 256, 768>}, {pipeline_mode = #tpu.pipeline_mode<synchronous>, transform_indices = @transform_2, window_bounds = array<i64: 1, 768>}, {pipeline_mode = #tpu.pipeline_mode<synchronous>, transform_indices = @transform_3, window_bounds = array<i64: 256, 256>}, {pipeline_mode = #tpu.pipeline_mode<synchronous>, transform_indices = @transform_4, window_bounds = array<i64: 1, 256>}, {pipeline_mode = #tpu.pipeline_mode<synchronous>, transform_indices = @transform_5, window_bounds = array<i64: 8, 128>}, {pipeline_mode = #tpu.pipeline_mode<synchronous>, transform_indices = @transform_6, window_bounds = array<i64: 8, 128>}, {pipeline_mode = #tpu.pipeline_mode<synchronous>, transform_indices = @transform_7, window_bounds = array<i64: 16, 256>}]} {
    %c0 = arith.constant 0 : index
    %c0_0 = arith.constant 0 : index
    %0 = vector.load %arg1[%c0, %c0_0] : memref<16x256xf32, #tpu.memory_space<vmem>>, vector<16x256xf32>
    %1 = arith.truncf %0 : vector<16x256xf32> to vector<16x256xbf16>
    %c0_1 = arith.constant 0 : index
    %c0_2 = arith.constant 0 : index
    %2 = vector.load %arg2[%c0_1, %c0_2] : memref<256x768xbf16, #tpu.memory_space<vmem>>, vector<256x768xbf16>
    %cst = arith.constant dense<0.000000e+00> : vector<16x768xf32>
    %3 = tpu.matmul %1, %2, %cst {dimension_numbers = #tpu.dot_dimension_numbers<[1], [0], [0], [1], [0, 0, 1, 1], [], []>} : vector<16x256xbf16>, vector<256x768xbf16>, vector<16x768xf32> -> vector<16x768xf32>
    %c0_3 = arith.constant 0 : index
    %c0_4 = arith.constant 0 : index
    %4 = vector.load %arg3[%c0_3, %c0_4] : memref<1x768xf32, #tpu.memory_space<vmem>>, vector<1x768xf32>
    %5 = vector.broadcast %4 : vector<1x768xf32> to vector<16x768xf32>
    %6 = arith.addf %3, %5 : vector<16x768xf32>
    %c0_5 = arith.constant 0 : index
    %c0_6 = arith.constant 0 : index
    %7 = vector.load %arg6[%c0_5, %c0_6] : memref<8x128xf32, #tpu.memory_space<vmem>>, vector<8x128xf32>
    %c0_7 = arith.constant 0 : index
    %c0_8 = arith.constant 0 : index
    %8 = vector.load %arg7[%c0_7, %c0_8] : memref<8x128xf32, #tpu.memory_space<vmem>>, vector<8x128xf32>
    %c0_9 = arith.constant 0 : index
    %c0_10 = arith.constant 0 : index
    %9 = vector.load %arg4[%c0_9, %c0_10] : memref<256x256xbf16, #tpu.memory_space<vmem>>, vector<256x256xbf16>
    %c0_11 = arith.constant 0 : index
    %c0_12 = arith.constant 0 : index
    %10 = vector.load %arg5[%c0_11, %c0_12] : memref<1x256xf32, #tpu.memory_space<vmem>>, vector<1x256xf32>
    %11 = tpu.iota {dimensions = array<i32: 0>} : vector<8x8xi32>
    %12 = tpu.iota {dimensions = array<i32: 1>} : vector<8x8xi32>
    %13 = arith.cmpi sle, %12, %11 : vector<8x8xi32>
    %cst_13 = arith.constant 0.000000e+00 : f32
    %cst_14 = arith.constant -1.000000e+30 : f32
    %14 = vector.broadcast %cst_13 : f32 to vector<8x8xf32>
    %15 = vector.broadcast %cst_14 : f32 to vector<8x8xf32>
    %16 = arith.select %13, %14, %15 : vector<8x8xi1>, vector<8x8xf32>
    %cst_15 = arith.constant 0.000000e+00 : f32
    %17 = vector.broadcast %cst_15 : f32 to vector<8x256xf32>
    %18 = vector.extract_strided_slice %6 {offsets = [0, 0], sizes = [8, 128], strides = [1, 1]} : vector<16x768xf32> to vector<8x128xf32>
    %19 = vector.extract_strided_slice %6 {offsets = [0, 256], sizes = [8, 128], strides = [1, 1]} : vector<16x768xf32> to vector<8x128xf32>
    %20 = vector.extract_strided_slice %6 {offsets = [0, 512], sizes = [8, 128], strides = [1, 1]} : vector<16x768xf32> to vector<8x128xf32>
    %21 = arith.mulf %18, %7 : vector<8x128xf32>
    %c64_i32 = arith.constant 64 : i32
    %22 = tpu.dynamic_rotate %18 by %c64_i32 dim 1 : vector<8x128xf32>, i32 -> vector<8x128xf32>
    %23 = arith.mulf %22, %8 : vector<8x128xf32>
    %24 = arith.addf %21, %23 : vector<8x128xf32>
    %25 = arith.mulf %19, %7 : vector<8x128xf32>
    %c64_i32_16 = arith.constant 64 : i32
    %26 = tpu.dynamic_rotate %19 by %c64_i32_16 dim 1 : vector<8x128xf32>, i32 -> vector<8x128xf32>
    %27 = arith.mulf %26, %8 : vector<8x128xf32>
    %28 = arith.addf %25, %27 : vector<8x128xf32>
    %29 = arith.truncf %24 : vector<8x128xf32> to vector<8x128xbf16>
    %30 = arith.truncf %28 : vector<8x128xf32> to vector<8x128xbf16>
    %cst_17 = arith.constant dense<0.000000e+00> : vector<8x8xf32>
    %31 = tpu.matmul %29, %30, %cst_17 {dimension_numbers = #tpu.dot_dimension_numbers<[1], [1], [0], [0], [0, 0, 1, 0], [], []>} : vector<8x128xbf16>, vector<8x128xbf16>, vector<8x8xf32> -> vector<8x8xf32>
    %cst_18 = arith.constant 0.0883883461 : f32
    %32 = vector.broadcast %cst_18 : f32 to vector<8x8xf32>
    %33 = arith.mulf %31, %32 : vector<8x8xf32>
    %34 = arith.addf %33, %16 : vector<8x8xf32>
    %cst_19 = arith.constant dense<0xFF800000> : vector<8xf32>
    %35 = vector.multi_reduction <maximumf>, %34, %cst_19 [1] : vector<8x8xf32> to vector<8xf32>
    %36 = vector.shape_cast %35 : vector<8xf32> to vector<8x1xf32>
    %37 = vector.broadcast %36 : vector<8x1xf32> to vector<8x8xf32>
    %38 = arith.subf %34, %37 : vector<8x8xf32>
    %39 = math.exp %38 : vector<8x8xf32>
    %cst_20 = arith.constant dense<0.000000e+00> : vector<8xf32>
    %40 = vector.multi_reduction <add>, %39, %cst_20 [1] : vector<8x8xf32> to vector<8xf32>
    %41 = vector.shape_cast %40 : vector<8xf32> to vector<8x1xf32>
    %42 = arith.truncf %39 : vector<8x8xf32> to vector<8x8xbf16>
    %43 = arith.truncf %20 : vector<8x128xf32> to vector<8x128xbf16>
    %cst_21 = arith.constant dense<0.000000e+00> : vector<8x128xf32>
    %44 = tpu.matmul %42, %43, %cst_21 {dimension_numbers = #tpu.dot_dimension_numbers<[1], [0], [0], [1], [0, 0, 1, 1], [], []>} : vector<8x8xbf16>, vector<8x128xbf16>, vector<8x128xf32> -> vector<8x128xf32>
    %45 = tpu.reciprocal %41 {approx = true} : vector<8x1xf32> -> vector<8x1xf32>
    %46 = vector.broadcast %45 : vector<8x1xf32> to vector<8x128xf32>
    %47 = arith.mulf %44, %46 : vector<8x128xf32>
    %48 = arith.truncf %47 : vector<8x128xf32> to vector<8x128xbf16>
    %49 = vector.extract_strided_slice %9 {offsets = [0, 0], sizes = [128, 256], strides = [1, 1]} : vector<256x256xbf16> to vector<128x256xbf16>
    %cst_22 = arith.constant dense<0.000000e+00> : vector<8x256xf32>
    %50 = tpu.matmul %48, %49, %cst_22 {dimension_numbers = #tpu.dot_dimension_numbers<[1], [0], [0], [1], [0, 0, 1, 1], [], []>} : vector<8x128xbf16>, vector<128x256xbf16>, vector<8x256xf32> -> vector<8x256xf32>
    %51 = arith.addf %17, %50 : vector<8x256xf32>
    %52 = vector.extract_strided_slice %6 {offsets = [0, 128], sizes = [8, 128], strides = [1, 1]} : vector<16x768xf32> to vector<8x128xf32>
    %53 = vector.extract_strided_slice %6 {offsets = [0, 384], sizes = [8, 128], strides = [1, 1]} : vector<16x768xf32> to vector<8x128xf32>
    %54 = vector.extract_strided_slice %6 {offsets = [0, 640], sizes = [8, 128], strides = [1, 1]} : vector<16x768xf32> to vector<8x128xf32>
    %55 = arith.mulf %52, %7 : vector<8x128xf32>
    %c64_i32_23 = arith.constant 64 : i32
    %56 = tpu.dynamic_rotate %52 by %c64_i32_23 dim 1 : vector<8x128xf32>, i32 -> vector<8x128xf32>
    %57 = arith.mulf %56, %8 : vector<8x128xf32>
    %58 = arith.addf %55, %57 : vector<8x128xf32>
    %59 = arith.mulf %53, %7 : vector<8x128xf32>
    %c64_i32_24 = arith.constant 64 : i32
    %60 = tpu.dynamic_rotate %53 by %c64_i32_24 dim 1 : vector<8x128xf32>, i32 -> vector<8x128xf32>
    %61 = arith.mulf %60, %8 : vector<8x128xf32>
    %62 = arith.addf %59, %61 : vector<8x128xf32>
    %63 = arith.truncf %58 : vector<8x128xf32> to vector<8x128xbf16>
    %64 = arith.truncf %62 : vector<8x128xf32> to vector<8x128xbf16>
    %cst_25 = arith.constant dense<0.000000e+00> : vector<8x8xf32>
    %65 = tpu.matmul %63, %64, %cst_25 {dimension_numbers = #tpu.dot_dimension_numbers<[1], [1], [0], [0], [0, 0, 1, 0], [], []>} : vector<8x128xbf16>, vector<8x128xbf16>, vector<8x8xf32> -> vector<8x8xf32>
    %cst_26 = arith.constant 0.0883883461 : f32
    %66 = vector.broadcast %cst_26 : f32 to vector<8x8xf32>
    %67 = arith.mulf %65, %66 : vector<8x8xf32>
    %68 = arith.addf %67, %16 : vector<8x8xf32>
    %cst_27 = arith.constant dense<0xFF800000> : vector<8xf32>
    %69 = vector.multi_reduction <maximumf>, %68, %cst_27 [1] : vector<8x8xf32> to vector<8xf32>
    %70 = vector.shape_cast %69 : vector<8xf32> to vector<8x1xf32>
    %71 = vector.broadcast %70 : vector<8x1xf32> to vector<8x8xf32>
    %72 = arith.subf %68, %71 : vector<8x8xf32>
    %73 = math.exp %72 : vector<8x8xf32>
    %cst_28 = arith.constant dense<0.000000e+00> : vector<8xf32>
    %74 = vector.multi_reduction <add>, %73, %cst_28 [1] : vector<8x8xf32> to vector<8xf32>
    %75 = vector.shape_cast %74 : vector<8xf32> to vector<8x1xf32>
    %76 = arith.truncf %73 : vector<8x8xf32> to vector<8x8xbf16>
    %77 = arith.truncf %54 : vector<8x128xf32> to vector<8x128xbf16>
    %cst_29 = arith.constant dense<0.000000e+00> : vector<8x128xf32>
    %78 = tpu.matmul %76, %77, %cst_29 {dimension_numbers = #tpu.dot_dimension_numbers<[1], [0], [0], [1], [0, 0, 1, 1], [], []>} : vector<8x8xbf16>, vector<8x128xbf16>, vector<8x128xf32> -> vector<8x128xf32>
    %79 = tpu.reciprocal %75 {approx = true} : vector<8x1xf32> -> vector<8x1xf32>
    %80 = vector.broadcast %79 : vector<8x1xf32> to vector<8x128xf32>
    %81 = arith.mulf %78, %80 : vector<8x128xf32>
    %82 = arith.truncf %81 : vector<8x128xf32> to vector<8x128xbf16>
    %83 = vector.extract_strided_slice %9 {offsets = [128, 0], sizes = [128, 256], strides = [1, 1]} : vector<256x256xbf16> to vector<128x256xbf16>
    %cst_30 = arith.constant dense<0.000000e+00> : vector<8x256xf32>
    %84 = tpu.matmul %82, %83, %cst_30 {dimension_numbers = #tpu.dot_dimension_numbers<[1], [0], [0], [1], [0, 0, 1, 1], [], []>} : vector<8x128xbf16>, vector<128x256xbf16>, vector<8x256xf32> -> vector<8x256xf32>
    %85 = arith.addf %51, %84 : vector<8x256xf32>
    %86 = vector.broadcast %10 : vector<1x256xf32> to vector<8x256xf32>
    %87 = arith.addf %85, %86 : vector<8x256xf32>
    %c0_31 = arith.constant 0 : index
    %c0_32 = arith.constant 0 : index
    %88 = vector.load %arg8[%c0_31, %c0_32] : memref<16x256xf32, #tpu.memory_space<vmem>>, vector<8x256xf32>
    tpu.vector_store %arg8[%c0_31, %c0_32], %87 {strides = array<i32>} : memref<16x256xf32, #tpu.memory_space<vmem>>, vector<8x256xf32>,
    %cst_33 = arith.constant 0.000000e+00 : f32
    %89 = vector.broadcast %cst_33 : f32 to vector<8x256xf32>
    %90 = vector.extract_strided_slice %6 {offsets = [8, 0], sizes = [8, 128], strides = [1, 1]} : vector<16x768xf32> to vector<8x128xf32>
    %91 = vector.extract_strided_slice %6 {offsets = [8, 256], sizes = [8, 128], strides = [1, 1]} : vector<16x768xf32> to vector<8x128xf32>
    %92 = vector.extract_strided_slice %6 {offsets = [8, 512], sizes = [8, 128], strides = [1, 1]} : vector<16x768xf32> to vector<8x128xf32>
    %93 = arith.mulf %90, %7 : vector<8x128xf32>
    %c64_i32_34 = arith.constant 64 : i32
    %94 = tpu.dynamic_rotate %90 by %c64_i32_34 dim 1 : vector<8x128xf32>, i32 -> vector<8x128xf32>
    %95 = arith.mulf %94, %8 : vector<8x128xf32>
    %96 = arith.addf %93, %95 : vector<8x128xf32>
    %97 = arith.mulf %91, %7 : vector<8x128xf32>
    %c64_i32_35 = arith.constant 64 : i32
    %98 = tpu.dynamic_rotate %91 by %c64_i32_35 dim 1 : vector<8x128xf32>, i32 -> vector<8x128xf32>
    %99 = arith.mulf %98, %8 : vector<8x128xf32>
    %100 = arith.addf %97, %99 : vector<8x128xf32>
    %101 = arith.truncf %96 : vector<8x128xf32> to vector<8x128xbf16>
    %102 = arith.truncf %100 : vector<8x128xf32> to vector<8x128xbf16>
    %cst_36 = arith.constant dense<0.000000e+00> : vector<8x8xf32>
    %103 = tpu.matmul %101, %102, %cst_36 {dimension_numbers = #tpu.dot_dimension_numbers<[1], [1], [0], [0], [0, 0, 1, 0], [], []>} : vector<8x128xbf16>, vector<8x128xbf16>, vector<8x8xf32> -> vector<8x8xf32>
    %cst_37 = arith.constant 0.0883883461 : f32
    %104 = vector.broadcast %cst_37 : f32 to vector<8x8xf32>
    %105 = arith.mulf %103, %104 : vector<8x8xf32>
    %106 = arith.addf %105, %16 : vector<8x8xf32>
    %cst_38 = arith.constant dense<0xFF800000> : vector<8xf32>
    %107 = vector.multi_reduction <maximumf>, %106, %cst_38 [1] : vector<8x8xf32> to vector<8xf32>
    %108 = vector.shape_cast %107 : vector<8xf32> to vector<8x1xf32>
    %109 = vector.broadcast %108 : vector<8x1xf32> to vector<8x8xf32>
    %110 = arith.subf %106, %109 : vector<8x8xf32>
    %111 = math.exp %110 : vector<8x8xf32>
    %cst_39 = arith.constant dense<0.000000e+00> : vector<8xf32>
    %112 = vector.multi_reduction <add>, %111, %cst_39 [1] : vector<8x8xf32> to vector<8xf32>
    %113 = vector.shape_cast %112 : vector<8xf32> to vector<8x1xf32>
    %114 = arith.truncf %111 : vector<8x8xf32> to vector<8x8xbf16>
    %115 = arith.truncf %92 : vector<8x128xf32> to vector<8x128xbf16>
    %cst_40 = arith.constant dense<0.000000e+00> : vector<8x128xf32>
    %116 = tpu.matmul %114, %115, %cst_40 {dimension_numbers = #tpu.dot_dimension_numbers<[1], [0], [0], [1], [0, 0, 1, 1], [], []>} : vector<8x8xbf16>, vector<8x128xbf16>, vector<8x128xf32> -> vector<8x128xf32>
    %117 = tpu.reciprocal %113 {approx = true} : vector<8x1xf32> -> vector<8x1xf32>
    %118 = vector.broadcast %117 : vector<8x1xf32> to vector<8x128xf32>
    %119 = arith.mulf %116, %118 : vector<8x128xf32>
    %120 = arith.truncf %119 : vector<8x128xf32> to vector<8x128xbf16>
    %121 = vector.extract_strided_slice %9 {offsets = [0, 0], sizes = [128, 256], strides = [1, 1]} : vector<256x256xbf16> to vector<128x256xbf16>
    %cst_41 = arith.constant dense<0.000000e+00> : vector<8x256xf32>
    %122 = tpu.matmul %120, %121, %cst_41 {dimension_numbers = #tpu.dot_dimension_numbers<[1], [0], [0], [1], [0, 0, 1, 1], [], []>} : vector<8x128xbf16>, vector<128x256xbf16>, vector<8x256xf32> -> vector<8x256xf32>
    %123 = arith.addf %89, %122 : vector<8x256xf32>
    %124 = vector.extract_strided_slice %6 {offsets = [8, 128], sizes = [8, 128], strides = [1, 1]} : vector<16x768xf32> to vector<8x128xf32>
    %125 = vector.extract_strided_slice %6 {offsets = [8, 384], sizes = [8, 128], strides = [1, 1]} : vector<16x768xf32> to vector<8x128xf32>
    %126 = vector.extract_strided_slice %6 {offsets = [8, 640], sizes = [8, 128], strides = [1, 1]} : vector<16x768xf32> to vector<8x128xf32>
    %127 = arith.mulf %124, %7 : vector<8x128xf32>
    %c64_i32_42 = arith.constant 64 : i32
    %128 = tpu.dynamic_rotate %124 by %c64_i32_42 dim 1 : vector<8x128xf32>, i32 -> vector<8x128xf32>
    %129 = arith.mulf %128, %8 : vector<8x128xf32>
    %130 = arith.addf %127, %129 : vector<8x128xf32>
    %131 = arith.mulf %125, %7 : vector<8x128xf32>
    %c64_i32_43 = arith.constant 64 : i32
    %132 = tpu.dynamic_rotate %125 by %c64_i32_43 dim 1 : vector<8x128xf32>, i32 -> vector<8x128xf32>
    %133 = arith.mulf %132, %8 : vector<8x128xf32>
    %134 = arith.addf %131, %133 : vector<8x128xf32>
    %135 = arith.truncf %130 : vector<8x128xf32> to vector<8x128xbf16>
    %136 = arith.truncf %134 : vector<8x128xf32> to vector<8x128xbf16>
    %cst_44 = arith.constant dense<0.000000e+00> : vector<8x8xf32>
    %137 = tpu.matmul %135, %136, %cst_44 {dimension_numbers = #tpu.dot_dimension_numbers<[1], [1], [0], [0], [0, 0, 1, 0], [], []>} : vector<8x128xbf16>, vector<8x128xbf16>, vector<8x8xf32> -> vector<8x8xf32>
    %cst_45 = arith.constant 0.0883883461 : f32
    %138 = vector.broadcast %cst_45 : f32 to vector<8x8xf32>
    %139 = arith.mulf %137, %138 : vector<8x8xf32>
    %140 = arith.addf %139, %16 : vector<8x8xf32>
    %cst_46 = arith.constant dense<0xFF800000> : vector<8xf32>
    %141 = vector.multi_reduction <maximumf>, %140, %cst_46 [1] : vector<8x8xf32> to vector<8xf32>
    %142 = vector.shape_cast %141 : vector<8xf32> to vector<8x1xf32>
    %143 = vector.broadcast %142 : vector<8x1xf32> to vector<8x8xf32>
    %144 = arith.subf %140, %143 : vector<8x8xf32>
    %145 = math.exp %144 : vector<8x8xf32>
    %cst_47 = arith.constant dense<0.000000e+00> : vector<8xf32>
    %146 = vector.multi_reduction <add>, %145, %cst_47 [1] : vector<8x8xf32> to vector<8xf32>
    %147 = vector.shape_cast %146 : vector<8xf32> to vector<8x1xf32>
    %148 = arith.truncf %145 : vector<8x8xf32> to vector<8x8xbf16>
    %149 = arith.truncf %126 : vector<8x128xf32> to vector<8x128xbf16>
    %cst_48 = arith.constant dense<0.000000e+00> : vector<8x128xf32>
    %150 = tpu.matmul %148, %149, %cst_48 {dimension_numbers = #tpu.dot_dimension_numbers<[1], [0], [0], [1], [0, 0, 1, 1], [], []>} : vector<8x8xbf16>, vector<8x128xbf16>, vector<8x128xf32> -> vector<8x128xf32>
    %151 = tpu.reciprocal %147 {approx = true} : vector<8x1xf32> -> vector<8x1xf32>
    %152 = vector.broadcast %151 : vector<8x1xf32> to vector<8x128xf32>
    %153 = arith.mulf %150, %152 : vector<8x128xf32>
    %154 = arith.truncf %153 : vector<8x128xf32> to vector<8x128xbf16>
    %155 = vector.extract_strided_slice %9 {offsets = [128, 0], sizes = [128, 256], strides = [1, 1]} : vector<256x256xbf16> to vector<128x256xbf16>
    %cst_49 = arith.constant dense<0.000000e+00> : vector<8x256xf32>
    %156 = tpu.matmul %154, %155, %cst_49 {dimension_numbers = #tpu.dot_dimension_numbers<[1], [0], [0], [1], [0, 0, 1, 1], [], []>} : vector<8x128xbf16>, vector<128x256xbf16>, vector<8x256xf32> -> vector<8x256xf32>
    %157 = arith.addf %123, %156 : vector<8x256xf32>
    %158 = vector.broadcast %10 : vector<1x256xf32> to vector<8x256xf32>
    %159 = arith.addf %157, %158 : vector<8x256xf32>
    %c8 = arith.constant 8 : index
    %c0_50 = arith.constant 0 : index
    %160 = vector.load %arg8[%c8, %c0_50] : memref<16x256xf32, #tpu.memory_space<vmem>>, vector<8x256xf32>
    tpu.vector_store %arg8[%c8, %c0_50], %159 {strides = array<i32>} : memref<16x256xf32, #tpu.memory_space<vmem>>, vector<8x256xf32>,
    return
  }
  func.func @transform_0(%arg0: i32) -> (i32, i32) {
    %c0_i32 = arith.constant 0 : i32
    %c0_i32_0 = arith.constant 0 : i32
    %c0_i32_1 = arith.constant 0 : i32
    return %c0_i32, %c0_i32_0 : i32, i32
  }
  func.func @transform_1(%arg0: i32) -> (i32, i32) {
    %c0_i32 = arith.constant 0 : i32
    %c0_i32_0 = arith.constant 0 : i32
    %c0_i32_1 = arith.constant 0 : i32
    return %c0_i32, %c0_i32_0 : i32, i32
  }
  func.func @transform_2(%arg0: i32) -> (i32, i32) {
    %c0_i32 = arith.constant 0 : i32
    %c0_i32_0 = arith.constant 0 : i32
    %c0_i32_1 = arith.constant 0 : i32
    return %c0_i32, %c0_i32_0 : i32, i32
  }
  func.func @transform_3(%arg0: i32) -> (i32, i32) {
    %c0_i32 = arith.constant 0 : i32
    %c0_i32_0 = arith.constant 0 : i32
    %c0_i32_1 = arith.constant 0 : i32
    return %c0_i32, %c0_i32_0 : i32, i32
  }
  func.func @transform_4(%arg0: i32) -> (i32, i32) {
    %c0_i32 = arith.constant 0 : i32
    %c0_i32_0 = arith.constant 0 : i32
    %c0_i32_1 = arith.constant 0 : i32
    return %c0_i32, %c0_i32_0 : i32, i32
  }
  func.func @transform_5(%arg0: i32) -> (i32, i32) {
    %c0_i32 = arith.constant 0 : i32
    %c0_i32_0 = arith.constant 0 : i32
    %c0_i32_1 = arith.constant 0 : i32
    return %c0_i32, %c0_i32_0 : i32, i32
  }
  func.func @transform_6(%arg0: i32) -> (i32, i32) {
    %c0_i32 = arith.constant 0 : i32
    %c0_i32_0 = arith.constant 0 : i32
    %c0_i32_1 = arith.constant 0 : i32
    return %c0_i32, %c0_i32_0 : i32, i32
  }
  func.func @transform_7(%arg0: i32) -> (i32, i32) {
    %c0_i32 = arith.constant 0 : i32
    %c0_i32_0 = arith.constant 0 : i32
    %c0_i32_1 = arith.constant 0 : i32
    return %c0_i32, %c0_i32_0 : i32, i32
  }
}

</mosaic_0001>

<bundles_post_ra>
// kernel: tpu_custom_call.1
= control target key start
LH: loop header
LB: loop body
LE: loop exit
PB: predicated region body
PF: predicated region fallthrough
CT: control target
= control target key end

     0   :  { %12 = vsyncpa [#allocation3], 0  ;;  %s2679_s0 = inlined_call_operand.hbm [shape: f32[16,256], index: 0, kind: input, shape index: {}]   ;;  %s2680_s1 = inlined_call_operand.hbm [shape: bf16[256,768], index: 1, kind: input, shape index: {}]   ;;  %s2681_s2 = inlined_call_operand.hbm [shape: f32[1,768], index: 2, kind: input, shape index: {}]   ;;  %s2682_s3 = inlined_call_operand.hbm [shape: bf16[256,256], index: 3, kind: input, shape index: {}]   ;;  %s2683_s4 = inlined_call_operand.hbm [shape: f32[1,256], index: 4, kind: input, shape index: {}]   ;;  %s2684_s5 = inlined_call_operand.vmem [shape: f32[8,128], index: 5, kind: input, shape index: {}]   ;;  %s2685_s6 = inlined_call_operand.hbm [shape: f32[8,128], index: 6, kind: input, shape index: {}]   ;;  %s2686_s7 = inlined_call_operand.hbm [shape: f32[16,256], index: 7, kind: output, shape index: {}]  }
   0x1   :  { %13 = vsyncpa [#allocation6], 0 }
   0x2   :  { %14 = vsyncpa [#allocation9], 0 }
   0x3   :  { %15 = vsyncpa [#allocation12], 0 }
   0x4   :  { %16 = vsyncpa [#allocation4], 0  ;;  %s2281_s24 = smov [#allocation5]  }
   0x5   :  { %s34_s25 = sshll.u32 %s2281_s24, 4  ;;  %s35_s25 = int_to_ptr.vmem [resolvable:$true] %s34_s25 }
   0x6   :  { %s2139_s26 = scalar_lea.vmem %s35_s25, 12288  ;;  %p2144_p1 = scmp.lt.s32.totalorder %s35_s25, %s35_s25 }
   0x7   :  { %p2140_p0 = scmp.ne.s32.totalorder %s35_s25, %s2139_s26  ;;  %p2145_p2 = scmp.lt.s32.totalorder %s2139_s26, %s2139_s26 }
   0x9   :  { %p2146_p3 = por %p2145_p2, %p2144_p1 }
   0xb   :  { %p2147_p4 = pnand %p2146_p3, %p2140_p0 }
   0xd   :  { %2150 = shalt.err (!%p2147_p4)
}
   0xe   :  { %s2282_s27 = smov 384   ;;  %s2283_s28 = smov 24  }
   0xf   :  { %40 = dma.hbm_to_vmem [thread:$0]  %s2680_s1, 12288, %s35_s25, [#allocation6], %s2282_s27, %s2282_s27, %s2283_s28  }
  0x10   :  { %s2284_s8 = smov [#allocation8]  }
  0x11   :  { %s56_s9 = sshll.u32 %s2284_s8, 4  ;;  %s57_s9 = int_to_ptr.vmem [resolvable:$true] %s56_s9 }
  0x12   :  { %s2159_s10 = scalar_lea.vmem %s57_s9, 4096  ;;  %p2164_p6 = scmp.lt.s32.totalorder %s57_s9, %s57_s9 }
  0x13   :  { %p2160_p5 = scmp.ne.s32.totalorder %s57_s9, %s2159_s10  ;;  %p2165_p7 = scmp.lt.s32.totalorder %s2159_s10, %s2159_s10 }
  0x15   :  { %p2166_p8 = por %p2165_p7, %p2164_p6 }
  0x17   :  { %p2167_p9 = pnand %p2166_p8, %p2160_p5 }
  0x19   :  { %2170 = shalt.err (!%p2167_p9)
}
  0x1a   :  { %s2285_s11 = smov 128   ;;  %s2286_s12 = smov 8  }
  0x1b   :  { %62 = dma.hbm_to_vmem [thread:$0]  %s2682_s3, 4096, %s57_s9, [#allocation9], %s2285_s11, %s2285_s11, %s2286_s12  }
  0x1c   :  { %s2287_s15 = smov [#allocation2]  }
  0x1d   :  { %s22_s16 = sshll.u32 %s2287_s15, 4  ;;  %s23_s16 = int_to_ptr.vmem [resolvable:$true] %s22_s16 }
  0x1e   :  { %s2179_s1 = scalar_lea.vmem %s23_s16, 512  ;;  %p2184_p11 = scmp.lt.s32.totalorder %s23_s16, %s23_s16 }
  0x1f   :  { %p2180_p10 = scmp.ne.s32.totalorder %s23_s16, %s2179_s1  ;;  %p2185_p12 = scmp.lt.s32.totalorder %s2179_s1, %s2179_s1 }
  0x21   :  { %p2186_p13 = por %p2185_p12, %p2184_p11 }
  0x23   :  { %p2187_p0 = pnand %p2186_p13, %p2180_p10 }
  0x25   :  { %2190 = shalt.err (!%p2187_p0)
}
  0x26   :  { %s2288_s17 = smov 256   ;;  %s2289_s18 = smov 16  }
  0x27   :  { %28 = dma.hbm_to_vmem [thread:$0]  %s2679_s0, 512, %s23_s16, [#allocation3], %s2288_s17, %s2288_s17, %s2289_s18  }
  0x28   :  { %s2290_s3 = smov [#allocation7]   ;;  %s2291_s22 = smov [#allocation10]  }
  0x29   :  { %s47_s21 = sshll.u32 %s2290_s3, 4  ;;  %s69_s23 = sshll.u32 %s2291_s22, 4  ;;  %s48_s21 = int_to_ptr.vmem [resolvable:$true] %s47_s21  ;;  %s70_s23 = int_to_ptr.vmem [resolvable:$true] %s69_s23 }
  0x2a   :  { %s2199_s24 = scalar_lea.vmem %s48_s21, 96  ;;  %p2204_p2 = scmp.lt.s32.totalorder %s48_s21, %s48_s21 }
  0x2b   :  { %p2200_p1 = scmp.ne.s32.totalorder %s48_s21, %s2199_s24  ;;  %p2205_p3 = scmp.lt.s32.totalorder %s2199_s24, %s2199_s24 }
  0x2d   :  { %p2206_p4 = por %p2205_p3, %p2204_p2 }
  0x2f   :  { %p2207_p5 = pnand %p2206_p4, %p2200_p1 }
  0x31   :  { %2210 = shalt.err (!%p2207_p5)
}
  0x32   :  { %50 = dma.hbm_to_vmem [thread:$0]  %s2681_s2, 96, %s48_s21, [#allocation6]  }
  0x33   :  { %s2219_s27 = scalar_lea.vmem %s70_s23, 32  ;;  %p2224_p7 = scmp.lt.s32.totalorder %s70_s23, %s70_s23 }
  0x34   :  { %p2220_p6 = scmp.ne.s32.totalorder %s70_s23, %s2219_s27  ;;  %p2225_p8 = scmp.lt.s32.totalorder %s2219_s27, %s2219_s27 }
  0x36   :  { %p2226_p9 = por %p2225_p8, %p2224_p7 }
  0x38   :  { %p2227_p10 = pnand %p2226_p9, %p2220_p6 }
  0x3a   :  { %2230 = shalt.err (!%p2227_p10)
}
  0x3b   :  { %72 = dma.hbm_to_vmem [thread:$0]  %s2683_s4, 32, %s70_s23, [#allocation9]  }
  0x3c   :  { %s2292_s29 = smov [#allocation11]  }
  0x3d   :  { %s81_s30 = sshll.u32 %s2292_s29, 4  ;;  %s82_s30 = int_to_ptr.vmem [resolvable:$true] %s81_s30 }
  0x3e   :  { %s2239_s8 = scalar_lea.vmem %s82_s30, 128  ;;  %p2244_p12 = scmp.lt.s32.totalorder %s82_s30, %s82_s30 }
  0x3f   :  { %p2240_p11 = scmp.ne.s32.totalorder %s82_s30, %s2239_s8  ;;  %p2245_p13 = scmp.lt.s32.totalorder %s2239_s8, %s2239_s8 }
  0x41   :  { %p2246_p0 = por %p2245_p13, %p2244_p12 }
  0x43   :  { %p2247_p1 = pnand %p2246_p0, %p2240_p11 }
  0x45   :  { %2250 = shalt.err (!%p2247_p1)
}
  0x46   :  { %84 = dma.hbm_to_vmem [thread:$0]  %s2685_s6, 128, %s82_s30, [#allocation12]  }
  0x47   :  { %2271 = dma.done.wait [#allocation3], 512  }
  0x48   :  { %2272 = vsyncadd [#allocation3], 4294966784 }
  0x49   :  { %2273 = dma.done.wait [#allocation6], 12384  }
  0x4a   :  { %2274 = vsyncadd [#allocation6], 4294954912 }
  0x4b   :  { %2275 = dma.done.wait [#allocation9], 4128  }
  0x4c   :  { %2276 = vsyncadd [#allocation9], 4294963168 }
  0x4d   :  { %2277 = dma.done.wait [#allocation12], 128  }
  0x4e   :  { %2278 = vsyncadd [#allocation12], 4294967168  ;;  %v1923_v0 = vld [vmem:[#allocation5 + $0x15c] ss:$24 sps:$4 sm:$0xff]   ;;  %v1925_v1 = vld [vmem:[#allocation5 + $0x158] ss:$24 sps:$4 sm:$0xff]  }
  0x4f   :  { %761 = vmatprep.subr.bf16.mxu1 %v1923_v0  ;;  %v1926_v2 = vld [vmem:[#allocation5 + $0x154] ss:$24 sps:$4 sm:$0xff]   ;;  %v1928_v3 = vld [vmem:[#allocation5 + $0x150] ss:$24 sps:$4 sm:$0xff]   ;;  %v1932_v6 = vld [vmem:[#allocation5 + $0x124] ss:$24 sps:$4 sm:$0xff]  }
  0x50   :  { %762 = vmatpush1.bf16.msra.mxu1 %v1925_v1  ;;  %v1929_v4 = vld [vmem:[#allocation5 + $0x12c] ss:$24 sps:$4 sm:$0xff]   ;;  %v1931_v5 = vld [vmem:[#allocation5 + $0x128] ss:$24 sps:$4 sm:$0xff]   ;;  %718 = vmatprep.subr.bf16.mxu0 %v1926_v2  ;;  %v1935_v8 = vld [vmem:[#allocation5 + $0xfc] ss:$24 sps:$4 sm:$0xff]  }
  0x51   :  { %719 = vmatpush1.bf16.msra.mxu0 %v1928_v3  ;;  %763 = vmatprep.subr.bf16.mxu1 %v1929_v4  ;;  %v1934_v7 = vld [vmem:[#allocation5 + $0x120] ss:$24 sps:$4 sm:$0xff]   ;;  %v1938_v10 = vld [vmem:[#allocation5 + $0xf4] ss:$24 sps:$4 sm:$0xff]   ;;  %v1940_v12 = vld [vmem:[#allocation5 + $0xf0] ss:$24 sps:$4 sm:$0xff]  }
  0x52   :  { %720 = vmatprep.subr.bf16.mxu0 %v1932_v6  ;;  %v1937_v9 = vld [vmem:[#allocation5 + $0xf8] ss:$24 sps:$4 sm:$0xff]   ;;  %v1941_v11 = vld [vmem:[#allocation5 + $0xcc] ss:$24 sps:$4 sm:$0xff]   ;;  %v1943_v14 = vld [vmem:[#allocation5 + $0xc8] ss:$24 sps:$4 sm:$0xff]   ;;  %v208_v6 = vlaneseq }
  0x53   :  { %v1944_v13 = vld [vmem:[#allocation5 + $0xc4] ss:$24 sps:$4 sm:$0xff]   ;;  %v1946_v16 = vld [vmem:[#allocation5 + $0xc0] ss:$24 sps:$4 sm:$0xff]   ;;  %v1950_v17 = vld [vmem:[#allocation5 + $0x94] ss:$24 sps:$4 sm:$0xff]  }
  0x54   :  { %764 = vmatpush1.bf16.msra.mxu1 %v1931_v5  ;;  %v1947_v15 = vld [vmem:[#allocation5 + $0x9c] ss:$24 sps:$4 sm:$0xff]   ;;  %v1949_v18 = vld [vmem:[#allocation5 + $0x98] ss:$24 sps:$4 sm:$0xff]   ;;  %v1953_v19 = vld [vmem:[#allocation5 + $0x6c] ss:$24 sps:$4 sm:$0xff]  }
  0x55   :  { %765 = vmatprep.subr.bf16.mxu1 %v1935_v8  ;;  %721 = vmatpush1.bf16.msra.mxu0 %v1934_v7  ;;  %v1952_v20 = vld [vmem:[#allocation5 + $0x90] ss:$24 sps:$4 sm:$0xff]   ;;  %v1956_v21 = vld [vmem:[#allocation5 + $0x64] ss:$24 sps:$4 sm:$0xff]   ;;  %v1958_v24 = vld [vmem:[#allocation5 + $0x60] ss:$24 sps:$4 sm:$0xff]  }
  0x56   :  { %722 = vmatprep.subr.bf16.mxu0 %v1938_v10  ;;  %v1955_v22 = vld [vmem:[#allocation5 + $0x68] ss:$24 sps:$4 sm:$0xff]   ;;  %v1959_v23 = vld [vmem:[#allocation5 + $0x3c] ss:$24 sps:$4 sm:$0xff]   ;;  %v1961_v26 = vld [vmem:[#allocation5 + $0x38] ss:$24 sps:$4 sm:$0xff]  }
  0x57   :  { %v1962_v25 = vld [vmem:[#allocation5 + $0x34] ss:$24 sps:$4 sm:$0xff]   ;;  %v1964_v28 = vld [vmem:[#allocation5 + $0x30] ss:$24 sps:$4 sm:$0xff]   ;;  %v1968_v29 = vld [vmem:[#allocation5 + $0x4] ss:$24 sps:$4 sm:$0xff]  }
  0x58   :  { %766 = vmatpush1.bf16.msra.mxu1 %v1937_v9  ;;  %v1965_v27 = vld [vmem:[#allocation5 + $0xc] ss:$24 sps:$4 sm:$0xff]   ;;  %v1967_v30 = vld [vmem:[#allocation5 + $0x8] ss:$24 sps:$4 sm:$0xff]   ;;  %v1971_v31 = vld [vmem:[#allocation5 + $0x2dc] ss:$24 sps:$4 sm:$0xff]  }
  0x59   :  { %767 = vmatprep.subr.bf16.mxu1 %v1941_v11  ;;  %723 = vmatpush1.bf16.msra.mxu0 %v1940_v12  ;;  %v1970_v32 = vld [vmem:[#allocation5] ss:$24 sps:$4 sm:$0xff]   ;;  %v1974_v33 = vld [vmem:[#allocation5 + $0x2d4] ss:$24 sps:$4 sm:$0xff]   ;;  %v1976_v36 = vld [vmem:[#allocation5 + $0x2d0] ss:$24 sps:$4 sm:$0xff]  }
  0x5a   :  { %724 = vmatprep.subr.bf16.mxu0 %v1944_v13  ;;  %v1973_v34 = vld [vmem:[#allocation5 + $0x2d8] ss:$24 sps:$4 sm:$0xff]   ;;  %v1977_v35 = vld [vmem:[#allocation5 + $0x2ac] ss:$24 sps:$4 sm:$0xff]   ;;  %v1979_v38 = vld [vmem:[#allocation5 + $0x2a8] ss:$24 sps:$4 sm:$0xff]  }
  0x5b   :  { %v1980_v37 = vld [vmem:[#allocation5 + $0x2a4] ss:$24 sps:$4 sm:$0xff]   ;;  %v1982_v40 = vld [vmem:[#allocation5 + $0x2a0] ss:$24 sps:$4 sm:$0xff]   ;;  %v1986_v41 = vld [vmem:[#allocation5 + $0x274] ss:$24 sps:$4 sm:$0xff]  }
  0x5c   :  { %768 = vmatpush1.bf16.msra.mxu1 %v1943_v14  ;;  %v1983_v39 = vld [vmem:[#allocation5 + $0x27c] ss:$24 sps:$4 sm:$0xff]   ;;  %v1985_v42 = vld [vmem:[#allocation5 + $0x278] ss:$24 sps:$4 sm:$0xff]   ;;  %v1989_v43 = vld [vmem:[#allocation5 + $0x24c] ss:$24 sps:$4 sm:$0xff]  }
  0x5d   :  { %769 = vmatprep.subr.bf16.mxu1 %v1947_v15  ;;  %725 = vmatpush1.bf16.msra.mxu0 %v1946_v16  ;;  %v1988_v44 = vld [vmem:[#allocation5 + $0x270] ss:$24 sps:$4 sm:$0xff]   ;;  %v1992_v46 = vld [vmem:[#allocation5 + $0x244] ss:$24 sps:$4 sm:$0xff]   ;;  %v1994_v48 = vld [vmem:[#allocation5 + $0x240] ss:$24 sps:$4 sm:$0xff]  }
  0x5e   :  { %726 = vmatprep.subr.bf16.mxu0 %v1950_v17  ;;  %v1991_v45 = vld [vmem:[#allocation5 + $0x248] ss:$24 sps:$4 sm:$0xff]   ;;  %v1995_v49 = vld [vmem:[#allocation5 + $0x21c] ss:$24 sps:$4 sm:$0xff]   ;;  %v1997_v53 = vld [vmem:[#allocation5 + $0x218] ss:$24 sps:$4 sm:$0xff]  }
  0x5f   :  { %v105_v47 = vld [vmem:[#allocation2 + $0x8] sm:$0xff]  ;;  %v107_v50 = vld [vmem:[#allocation2 + $0x18] sm:$0xff]  ;;  %v104_v2 = vld [vmem:[#allocation2] sm:$0xff]  ;;  %v2365_v7 = vshrl.u32 %v208_v6, 7  ;;  %v2293_v11 = vmov 0.0   ;;  %s2294_s4 = smov 64  }
  0x60   :  { %770 = vmatpush1.bf16.msra.mxu1 %v1949_v18  ;;  %v1998_v51 = vld [vmem:[#allocation5 + $0x214] ss:$24 sps:$4 sm:$0xff]   ;;  %v109_v52 = vpack.c.bf16 %v107_v50, %v105_v47  ;;  %v2000_v55 = vld [vmem:[#allocation5 + $0x210] ss:$24 sps:$4 sm:$0xff]   ;;  %v2004_v56 = vld [vmem:[#allocation5 + $0x1e4] ss:$24 sps:$4 sm:$0xff]  }
  0x61   :  { %771 = vmatprep.subr.bf16.mxu1 %v1953_v19  ;;  %727 = vmatpush1.bf16.msra.mxu0 %v1952_v20  ;;  %v2001_v54 = vld [vmem:[#allocation5 + $0x1ec] ss:$24 sps:$4 sm:$0xff]   ;;  %v2003_v57 = vld [vmem:[#allocation5 + $0x1e8] ss:$24 sps:$4 sm:$0xff]   ;;  %v2007_v58 = vld [vmem:[#allocation5 + $0x1bc] ss:$24 sps:$4 sm:$0xff]  }
  0x62   :  { %728 = vmatprep.subr.bf16.mxu0 %v1956_v21  ;;  %793 = vmatprep.mubr.bf16.mxu1 %v109_v52  ;;  %v2006_v59 = vld [vmem:[#allocation5 + $0x1e0] ss:$24 sps:$4 sm:$0xff]   ;;  %v2010_v60 = vld [vmem:[#allocation5 + $0x1b4] ss:$24 sps:$4 sm:$0xff]   ;;  %v2012_v63 = vld [vmem:[#allocation5 + $0x1b0] ss:$24 sps:$4 sm:$0xff]  }
  0x63   :  { %750 = vmatprep.mubr.bf16.mxu0 %v109_v52  ;;  %v2009_v61 = vld [vmem:[#allocation5 + $0x1b8] ss:$24 sps:$4 sm:$0xff]   ;;  %v2013_v62 = vld [vmem:[#allocation5 + $0x18c] ss:$24 sps:$4 sm:$0xff]   ;;  %v2015_v1 = vld [vmem:[#allocation5 + $0x188] ss:$24 sps:$4 sm:$0xff]  }
  0x64   :  { %772 = vmatpush1.bf16.msra.mxu1 %v1955_v22  ;;  %v2016_v0 = vld [vmem:[#allocation5 + $0x184] ss:$24 sps:$4 sm:$0xff]   ;;  %v106_v3 = vld [vmem:[#allocation2 + $0x10] sm:$0xff]  ;;  %v2018_v4 = vld [vmem:[#allocation5 + $0x180] ss:$24 sps:$4 sm:$0xff]   ;;  %v218_v8 = vsub.s32 2, %v2365_v7 }
  0x65   :  { %773 = vmatprep.subr.bf16.mxu1 %v1959_v23  ;;  %729 = vmatpush1.bf16.msra.mxu0 %v1958_v24  ;;  %v2360_v5 = vpack.c.bf16 %v106_v3, %v104_v2  ;;  %v2368_v9 = vld [vmem:[#allocation7] sm:$0x3f]  ;;  %v210_v10 = vsub.s32 0, %v2365_v7  ;;  %v214_v13 = vsub.s32 1, %v2365_v7  ;;  %vm2295_vm0 = vmmov 0  }
  0x66   :  { %730 = vmatprep.subr.bf16.mxu0 %v1962_v25  ;;  %v219_v12 = vrot.slane %v2368_v9, %v218_v8  ;;  %v2019_v21 = vld [vmem:[#allocation5 + $0x160] ss:$24 sps:$4 sm:$0xff]   ;;  %v2021_v22 = vld [vmem:[#allocation5 + $0x164] ss:$24 sps:$4 sm:$0xff]   ;;  %v2024_v25 = vld [vmem:[#allocation5 + $0x134] ss:$24 sps:$4 sm:$0xff]  }
  0x67   :  { %v211_v14 = vrot.slane %v2368_v9, %v210_v10  ;;  %v2382_v17 = vrot.slane %v2368_v9, %v214_v13  ;;  %v2048_v47 = vld [vmem:[#allocation5 + $0x2b4] ss:$24 sps:$4 sm:$0xff]   ;;  %v2049_v50 = vld [vmem:[#allocation5 + $0x280] ss:$24 sps:$4 sm:$0xff]   ;;  %vm942_vm2 = vcmask 64512   ;;  %vm957_vm3 = vcmask 1043456  }
  0x68   :  { %774 = vmatpush1.bf16.msra.mxu1 %v1961_v26 }
  0x69   :  { %775 = vmatprep.subr.bf16.mxu1 %v1965_v27  ;;  %731 = vmatpush1.bf16.msra.mxu0 %v1964_v28  ;;  %v2398_v28 = vld [vmem:[%s2684_s5] sm:$0xff]  ;;  %s2298_s5 = smov [#allocation13]  }
  0x6a   :  { %732 = vmatprep.subr.bf16.mxu0 %v1968_v29  ;;  %s1694_s11 = sshll.u32 %s2298_s5, 4  ;;  %s1695_s11 = int_to_ptr.vmem [resolvable:$true] %s1694_s11 }
  0x6b   :  { %s2251_s12 = scalar_lea.vmem %s1695_s11, 512  ;;  %p2256_p3 = scmp.lt.s32.totalorder %s1695_s11, %s1695_s11 }
  0x6c   :  { %776 = vmatpush1.bf16.msra.mxu1 %v1967_v30  ;;  %v2022_v30 = vld [vmem:[#allocation5 + $0x130] ss:$24 sps:$4 sm:$0xff]   ;;  %p2252_p2 = scmp.ne.s32.totalorder %s1695_s11, %s2251_s12  ;;  %p2257_p4 = scmp.lt.s32.totalorder %s2251_s12, %s2251_s12 }
  0x6d   :  { %777 = vmatprep.subr.bf16.mxu1 %v1971_v31  ;;  %733 = vmatpush1.bf16.msra.mxu0 %v1970_v32 }
  0x6e   :  { %734 = vmatprep.subr.bf16.mxu0 %v1974_v33  ;;  %v2027_v33 = vld [vmem:[#allocation5 + $0x104] ss:$24 sps:$4 sm:$0xff]   ;;  %p2258_p5 = por %p2257_p4, %p2256_p3 }
  0x70   :  { %778 = vmatpush2.bf16.msra.mxu1 %v1973_v34  ;;  %v2025_v34 = vld [vmem:[#allocation5 + $0x100] ss:$24 sps:$4 sm:$0xff]   ;;  %p2259_p6 = pnand %p2258_p5, %p2252_p2 }
  0x71   :  { %779 = vmatprep.subr.bf16.mxu1 %v1977_v35  ;;  %735 = vmatpush2.bf16.msra.mxu0 %v1976_v36  ;;  %v2030_v35 = vld [vmem:[#allocation5 + $0xd4] ss:$24 sps:$4 sm:$0xff]   ;;  %v2028_v36 = vld [vmem:[#allocation5 + $0xd0] ss:$24 sps:$4 sm:$0xff]  }
  0x72   :  { %736 = vmatprep.subr.bf16.mxu0 %v1980_v37  ;;  %v2033_v37 = vld [vmem:[#allocation5 + $0xa4] ss:$24 sps:$4 sm:$0xff]  }
  0x74   :  { %780 = vmatpush2.bf16.msra.mxu1 %v1979_v38  ;;  %v2031_v38 = vld [vmem:[#allocation5 + $0xa0] ss:$24 sps:$4 sm:$0xff]  }
  0x75   :  { %781 = vmatprep.subr.bf16.mxu1 %v1983_v39  ;;  %737 = vmatpush2.bf16.msra.mxu0 %v1982_v40  ;;  %v2036_v39 = vld [vmem:[#allocation5 + $0x74] ss:$24 sps:$4 sm:$0xff]   ;;  %v2034_v40 = vld [vmem:[#allocation5 + $0x70] ss:$24 sps:$4 sm:$0xff]  }
  0x76   :  { %738 = vmatprep.subr.bf16.mxu0 %v1986_v41  ;;  %v2039_v41 = vld [vmem:[#allocation5 + $0x44] ss:$24 sps:$4 sm:$0xff]  }
  0x78   :  { %782 = vmatpush2.bf16.msra.mxu1 %v1985_v42  ;;  %v2037_v42 = vld [vmem:[#allocation5 + $0x40] ss:$24 sps:$4 sm:$0xff]  }
  0x79   :  { %783 = vmatprep.subr.bf16.mxu1 %v1989_v43  ;;  %739 = vmatpush2.bf16.msra.mxu0 %v1988_v44  ;;  %v2042_v43 = vld [vmem:[#allocation5 + $0x14] ss:$24 sps:$4 sm:$0xff]   ;;  %v2040_v44 = vld [vmem:[#allocation5 + $0x10] ss:$24 sps:$4 sm:$0xff]  }
  0x7a   :  { %740 = vmatprep.subr.bf16.mxu0 %v1992_v46  ;;  %v2043_v46 = vld [vmem:[#allocation5 + $0x2e0] ss:$24 sps:$4 sm:$0xff]  }
  0x7c   :  { %784 = vmatpush2.bf16.msra.mxu1 %v1991_v45  ;;  %v2045_v45 = vld [vmem:[#allocation5 + $0x2e4] ss:$24 sps:$4 sm:$0xff]  }
  0x7d   :  { %785 = vmatprep.subr.bf16.mxu1 %v1995_v49  ;;  %741 = vmatpush2.bf16.msra.mxu0 %v1994_v48  ;;  %v2046_v48 = vld [vmem:[#allocation5 + $0x2b0] ss:$24 sps:$4 sm:$0xff]   ;;  %v2051_v49 = vld [vmem:[#allocation5 + $0x284] ss:$24 sps:$4 sm:$0xff]  }
  0x7e   :  { %742 = vmatprep.subr.bf16.mxu0 %v1998_v51  ;;  %v2054_v51 = vld [vmem:[#allocation5 + $0x254] ss:$24 sps:$4 sm:$0xff]  }
  0x80   :  { %786 = vmatpush2.bf16.msra.mxu1 %v1997_v53  ;;  %v2057_v53 = vld [vmem:[#allocation5 + $0x224] ss:$24 sps:$4 sm:$0xff]  }
  0x81   :  { %787 = vmatprep.subr.bf16.mxu1 %v2001_v54  ;;  %743 = vmatpush2.bf16.msra.mxu0 %v2000_v55  ;;  %v2055_v54 = vld [vmem:[#allocation5 + $0x220] ss:$24 sps:$4 sm:$0xff]   ;;  %v2060_v55 = vld [vmem:[#allocation5 + $0x1f4] ss:$24 sps:$4 sm:$0xff]  }
  0x82   :  { %744 = vmatprep.subr.bf16.mxu0 %v2004_v56  ;;  %v2058_v56 = vld [vmem:[#allocation5 + $0x1f0] ss:$24 sps:$4 sm:$0xff]  }
  0x84   :  { %788 = vmatpush2.bf16.msra.mxu1 %v2003_v57  ;;  %v2063_v57 = vld [vmem:[#allocation5 + $0x1c4] ss:$24 sps:$4 sm:$0xff]  }
  0x85   :  { %789 = vmatprep.subr.bf16.mxu1 %v2007_v58  ;;  %745 = vmatpush2.bf16.msra.mxu0 %v2006_v59  ;;  %v2061_v58 = vld [vmem:[#allocation5 + $0x1c0] ss:$24 sps:$4 sm:$0xff]   ;;  %v2066_v59 = vld [vmem:[#allocation5 + $0x194] ss:$24 sps:$4 sm:$0xff]  }
  0x86   :  { %746 = vmatprep.subr.bf16.mxu0 %v2010_v60  ;;  %v2064_v60 = vld [vmem:[#allocation5 + $0x190] ss:$24 sps:$4 sm:$0xff]  }
  0x88   :  { %790 = vmatpush2.bf16.msra.mxu1 %v2009_v61  ;;  %v2409_v61 = vld [vmem:[#allocation11] sm:$0xff] }
  0x89   :  { %791 = vmatprep.subr.bf16.mxu1 %v2013_v62  ;;  %747 = vmatpush2.bf16.msra.mxu0 %v2012_v63 }
  0x8a   :  { %748 = vmatprep.subr.bf16.mxu0 %v2016_v0 }
  0x8c   :  { %792 = vmatpush2.bf16.msra.mxu1 %v2015_v1 }
  0x8d   :  { %749 = vmatpush2.bf16.msra.mxu0 %v2018_v4  ;;  %1857 = vmatprep.subr.bf16.mxu1 %v2293_v11 }
  0x8e   :  { %804 = vmatprep.subr.bf16.mxu0 %v2021_v22 }
  0x8f   :  { %794 = vmatmul.mubr.bf16.vlgmr.msra.gmra.mxu1 %v2360_v5 }
  0x90   :  { %751 = vmatmul.mubr.bf16.vlgmr.msra.gmra.mxu0 %v2360_v5  ;;  %1859 = vmatprep.mubr.msk.bf16.mxu1 %vm2295_vm0, %v2293_v11 }
  0x91   :  { %836 = vmatprep.mubr.bf16.mxu0 %v109_v52  ;;  %805 = vmatpush1.bf16.msra.mxu0 %v2019_v21  ;;  %v2052_v52 = vld [vmem:[#allocation5 + $0x250] ss:$24 sps:$4 sm:$0xff]  }
  0x92   :  { %806 = vmatprep.subr.bf16.mxu0 %v2024_v25 }
  0x95   :  { %807 = vmatpush1.bf16.msra.mxu0 %v2022_v30 }
  0x96   :  { %808 = vmatprep.subr.bf16.mxu0 %v2027_v33  ;;  %v226_v33 = vsub.s32 4, %v2365_v7 }
  0x99   :  { %809 = vmatpush1.bf16.msra.mxu0 %v2025_v34 }
  0x9a   :  { %810 = vmatprep.subr.bf16.mxu0 %v2030_v35  ;;  %v230_v35 = vsub.s32 5, %v2365_v7 }
  0x9d   :  { %811 = vmatpush1.bf16.msra.mxu0 %v2028_v36 }
  0x9e   :  { %812 = vmatprep.subr.bf16.mxu0 %v2033_v37  ;;  %v227_v37 = vrot.slane %v2368_v9, %v226_v33 }
  0xa1   :  { %813 = vmatpush1.bf16.msra.mxu0 %v2031_v38 }
  0xa2   :  { %814 = vmatprep.subr.bf16.mxu0 %v2036_v39  ;;  %v231_v39 = vrot.slane %v2368_v9, %v230_v35 }
  0xa5   :  { %815 = vmatpush1.bf16.msra.mxu0 %v2034_v40 }
  0xa6   :  { %816 = vmatprep.subr.bf16.mxu0 %v2039_v41 }
  0xa9   :  { %817 = vmatpush1.bf16.msra.mxu0 %v2037_v42 }
  0xaa   :  { %818 = vmatprep.subr.bf16.mxu0 %v2042_v43 }
  0xad   :  { %819 = vmatpush1.bf16.msra.mxu0 %v2040_v44 }
  0xae   :  { %820 = vmatprep.subr.bf16.mxu0 %v2045_v45 }
  0xb1   :  { %821 = vmatpush2.bf16.msra.mxu0 %v2043_v46 }
  0xb2   :  { %822 = vmatprep.subr.bf16.mxu0 %v2048_v47 }
  0xb5   :  { %823 = vmatpush2.bf16.msra.mxu0 %v2046_v48 }
  0xb6   :  { %824 = vmatprep.subr.bf16.mxu0 %v2051_v49 }
  0xb9   :  { %825 = vmatpush2.bf16.msra.mxu0 %v2049_v50 }
  0xba   :  { %826 = vmatprep.subr.bf16.mxu0 %v2054_v51 }
  0xbd   :  { %827 = vmatpush2.bf16.msra.mxu0 %v2052_v52 }
  0xbe   :  { %828 = vmatprep.subr.bf16.mxu0 %v2057_v53 }
  0xc1   :  { %829 = vmatpush2.bf16.msra.mxu0 %v2055_v54 }
  0xc2   :  { %830 = vmatprep.subr.bf16.mxu0 %v2060_v55 }
  0xc5   :  { %831 = vmatpush2.bf16.msra.mxu0 %v2058_v56 }
  0xc6   :  { %832 = vmatprep.subr.bf16.mxu0 %v2063_v57 }
  0xc9   :  { %833 = vmatpush2.bf16.msra.mxu0 %v2061_v58 }
  0xca   :  { %834 = vmatprep.subr.bf16.mxu0 %v2066_v59 }
  0xcd   :  { %835 = vmatpush2.bf16.msra.mxu0 %v2064_v60 }
  0xd0   :  { %837 = vmatmul.mubr.bf16.vlgmr.msra.gmra.mxu0 %v2360_v5 }
 0x14f   :  { %v795_v15 = vpop.f32.mrf.mxu1 }
 0x150   :  { %v2377_v16 = vadd.f32 %v795_v15, %v219_v12  ;;  %v752_v18 = vpop.f32.mrf.mxu0 }
 0x151   :  { %v2384_v19 = vpop.f32.mrf.mxu1  ;;  %v2386_v20 = vadd.f32 %v752_v18, %v211_v14  ;;  %v2296_v18 = vmov -1e+30  }
 0x152   :  { %894 = vrot.lane.b32.xlu0 %v2377_v16, %s2294_s4  ;;  %v754_v23 = vpop.f32.mrf.mxu0  ;;  %v893_v63 = vmul.f32 %v2398_v28, %v2377_v16 }
 0x153   :  { %v799_v24 = vpop.f32.mrf.mxu1  ;;  %v755_v26 = vadd.f32 %v754_v23, %v2382_v17  ;;  %v888_v8 = vmul.f32 %v2398_v28, %v2386_v20 }
 0x154   :  { %v2393_v27 = vadd.f32 %v799_v24, %v219_v12  ;;  %v756_v29 = vpop.f32.mrf.mxu0 }
 0x155   :  { %v2401_v31 = vmul.f32 %v2398_v28, %v755_v26  ;;  %v2403_v32 = vadd.f32 %v756_v29, %v211_v14  ;;  %v885_v14 = vand.u32 127, %v208_v6  ;;  %v2422_v15 = vpop.f32.mrf.mxu1  ;;  %v222_v6 = vsub.s32 3, %v2365_v7 }
 0x156   :  { %889 = vrot.lane.b32.xlu0 %v2386_v20, %s2294_s4  ;;  %v2432_v30 = vpop.f32.mrf.mxu0 }
 0x157   :  { %vm886_vm1 = vcmp.le.s32.totalorder %v885_v14, %v2365_v7  ;;  %v2430_v29 = vrot.slane %v2368_v9, %v222_v6  ;;  %v2482_v35 = vadd.f32 %v2432_v30, %v2382_v17  ;;  %v2500_v17 = vld [vmem:[#allocation8 + $0xd0] ss:$8 sps:$4 sm:$0xff]   ;;  %v2503_v30 = vld [vmem:[#allocation8 + $0xc4] ss:$8 sps:$4 sm:$0xff]  }
 0x158   :  { %v2424_v21 = vsel %vm886_vm1, 0.0, %v2296_v18 }
 0x159   :  { %v798_v36 = vadd.f32 %v2384_v19, %v2430_v29 }
 0x15a   :  { %1005 = vrot.lane.b32.xlu0 %v755_v26, %s2294_s4 }
 0x15b   :  { %v1009_v54 = vmul.f32 %v2398_v28, %v798_v36 }
 0x190   :  { %v838_v34 = vpop.f32.mrf.mxu0 }
 0x191   :  { %v839_v40 = vadd.f32 %v838_v34, %v227_v37  ;;  %v2476_v34 = vadd.f32 %v2422_v15, %v2430_v29  ;;  %v2494_v15 = vld [vmem:[#allocation8 + $0xe0] ss:$8 sps:$4 sm:$0xff]   ;;  %v2497_v29 = vld [vmem:[#allocation8 + $0xd4] ss:$8 sps:$4 sm:$0xff]  }
 0x192   :  { %v840_v38 = vpop.f32.mrf.mxu0 }
 0x193   :  { %v953_v43 = vpack.c.bf16 %v839_v40, %v839_v40  ;;  %v2509_v40 = vld [vmem:[#allocation8 + $0xb4] ss:$8 sps:$4 sm:$0xff]  }
 0x194   :  { %v842_v41 = vpop.f32.mrf.mxu0 }
 0x195   :  { %v843_v42 = vadd.f32 %v842_v41, %v227_v37  ;;  %v959_v47 = vsel %vm957_vm3, %v953_v43, 0  ;;  %v2488_v37 = vld [vmem:[#allocation8 + $0xf4] ss:$8 sps:$4 sm:$0xff]   ;;  %v2512_v41 = vld [vmem:[#allocation8 + $0xb0] ss:$8 sps:$4 sm:$0xff]  }
 0x196   :  { %v844_v44 = vpop.f32.mrf.mxu0  ;;  %v2518_v43 = vld [vmem:[#allocation8 + $0xa0] ss:$8 sps:$4 sm:$0xff]  }
 0x197   :  { %v1439_v45 = vpack.c.bf16 %v843_v42, %v843_v42  ;;  %v845_v46 = vadd.f32 %v844_v44, %v231_v39  ;;  %v2515_v42 = vld [vmem:[#allocation8 + $0xa4] ss:$8 sps:$4 sm:$0xff]   ;;  %v2521_v44 = vld [vmem:[#allocation8 + $0x94] ss:$8 sps:$4 sm:$0xff]  }
 0x199   :  { %v2443_v48 = vsel %vm957_vm3, %v1439_v45, 0  ;;  %v1553_v19 = vpack.c.bf16 %v845_v46, %v845_v46  ;;  %v2524_v45 = vld [vmem:[#allocation8 + $0x90] ss:$8 sps:$4 sm:$0xff]   ;;  %v2528_v46 = vld [vmem:[#allocation8 + $0x84] ss:$8 sps:$4 sm:$0xff]  }
 0x19b   :  { %v2447_v49 = vsel %vm957_vm3, %v1553_v19, 0  ;;  %v2297_v19 = vmov 0  }
 0x19c   :  { %1351 = vmatprep.mubr.bf16.mxu0 %v2297_v19 }
 0x1c4   :  { %v895_v62 = vpop.permute.xlu0 %894 }
 0x1c5   :  { %v896_v0 = vmul.f32 %v895_v62, %v2409_v61  ;;  %v841_v62 = vadd.f32 %v840_v38, %v231_v39  ;;  %v2490_v38 = vld [vmem:[#allocation8 + $0xe4] ss:$8 sps:$4 sm:$0xff]   ;;  %v2506_v39 = vld [vmem:[#allocation8 + $0xc0] ss:$8 sps:$4 sm:$0xff]  }
 0x1c7   :  { %v897_v1 = vadd.f32 %v896_v0, %v893_v63  ;;  %v1068_v0 = vpack.c.bf16 %v841_v62, %v841_v62 }
 0x1c8   :  { %v890_v2 = vpop.permute.xlu0 %889 }
 0x1c9   :  { %v899_v3 = vpack.c.bf16 %v897_v1, %v897_v1  ;;  %v891_v4 = vmul.f32 %v890_v2, %v2409_v61  ;;  %v1073_v2 = vsel %vm957_vm3, %v1068_v0, 0 }
 0x1cb   :  { %1858 = vmatpush3.bf16.xpose.msra.mxu1 %v899_v3  ;;  %v892_v12 = vadd.f32 %v891_v4, %v888_v8 }
 0x1cc   :  { %1863 = vmatprep.subr.bf16.mxu1 %v2293_v11  ;;  %v1006_v55 = vpop.permute.xlu0 %1005 }
 0x1cd   :  { %v898_v5 = vpack.c.bf16 %v892_v12, %v892_v12  ;;  %v1007_v58 = vmul.f32 %v1006_v55, %v2409_v61 }
 0x1cf   :  { %v1008_v63 = vadd.f32 %v1007_v58, %v2401_v31 }
 0x1d1   :  { %v1014_v1 = vpack.c.bf16 %v1008_v63, %v1008_v63 }
 0x1d2   :  { %1860 = vmatmul.mubr.bf16.vlgmr.msra.gmra.mxu1 %v898_v5 }
 0x1d3   :  { %1865 = vmatprep.mubr.msk.bf16.mxu1 %vm2295_vm0, %v2293_v11  ;;  %1864 = vmatpush3.bf16.msra.mxu1 %v959_v47  ;;  %v2530_v47 = vld [vmem:[#allocation8 + $0x80] ss:$8 sps:$4 sm:$0xff]  }
 0x1d4   :  { %1869 = vmatprep.subr.bf16.mxu1 %v2293_v11 }
 0x292   :  { %v934_v16 = vpop.f32.mrf.mxu1 }
 0x293   :  { %v940_v20 = vmul.f32 0.088388346, %v934_v16 }
 0x294   :  { %v1861_v22 = vpop.f32.mrf.mxu1 }
 0x295   :  { %v941_v23 = vadd.f32 %v940_v20, %v2424_v21 }
 0x296   :  { %v937_v24 = vpop.f32.mrf.mxu1 }
 0x297   :  { %v943_v25 = vsel %vm942_vm2, %v941_v23, -inf }
 0x298   :  { %944 = vmax.xlane.f32.xlu1 %v943_v25  ;;  %v1862_v26 = vpop.f32.mrf.mxu1 }
 0x2a9   :  { %1010 = vrot.lane.b32.xlu1 %v798_v36, %s2294_s4  ;;  %v2486_v36 = vld [vmem:[#allocation8 + $0xf0] ss:$8 sps:$4 sm:$0xff]  }
 0x321   :  { %v945_v9 = vpop.xlane.xlu1 %944 }
 0x322   :  { %v946_v50 = vsub.f32 %v941_v23, %v945_v9 }
 0x324   :  { %v947_v51 = vmul.f32 1.442695, %v946_v50 }
 0x325   :  { %v1011_v52 = vpop.permute.xlu1 %1010 }
 0x326   :  { %2115 = vpow2.f32 %v947_v51  ;;  %v1012_v53 = vmul.f32 %v1011_v52, %v2409_v61  ;;  %v1380_v52 = vmul.f32 %v2398_v28, %v2393_v27 }
 0x328   :  { %v1013_v56 = vadd.f32 %v1012_v53, %v1009_v54 }
 0x32a   :  { %v1015_v60 = vpack.c.bf16 %v1013_v56, %v1013_v56 }
 0x333   :  { %v2451_v57 = vpop.eup %2115 }
 0x334   :  { %v952_v59 = vpack.c.bf16 %v2451_v57, %v2451_v57 }
 0x336   :  { %1866 = vmatmul.mubr.msk.bf16.vlgmr.msra.gmra.mxu1 %vm942_vm2, %v952_v59 }
 0x337   :  { %1870 = vmatpush3.bf16.xpose.msra.mxu1 %v1015_v60  ;;  %1871 = vmatprep.mubr.msk.bf16.mxu1 %vm2295_vm0, %v2293_v11 }
 0x338   :  { %1875 = vmatprep.subr.bf16.mxu1 %v2293_v11 }
 0x33e   :  { %1872 = vmatmul.mubr.bf16.vlgmr.msra.gmra.mxu1 %v1014_v1  ;;  %v1375_v1 = vmul.f32 %v2398_v28, %v2403_v32 }
 0x33f   :  { %1876 = vmatpush3.bf16.msra.mxu1 %v1073_v2  ;;  %1877 = vmatprep.mubr.msk.bf16.mxu1 %vm2295_vm0, %v2293_v11 }
 0x340   :  { %1198 = vmatprep.subr.bf16.mxu1 %v2488_v37 }
 0x3f6   :  { %v2464_v3 = vpop.f32.mrf.mxu1 }
 0x3f8   :  { %v1867_v4 = vpop.f32.mrf.mxu1 }
 0x3fa   :  { %v998_v8 = vpop.f32.mrf.mxu1 }
 0x3fb   :  { %v2550_v8 = vld [vmem:[#allocation8 + $0x70] ss:$8 sps:$4 sm:$0xff]  }
 0x3fc   :  { %v1868_v12 = vpop.f32.mrf.mxu1 }
 0x3fd   :  { %v2554_v12 = vld [vmem:[#allocation8 + $0x64] ss:$8 sps:$4 sm:$0xff]  }
 0x3fe   :  { %v1050_v5 = vpop.f32.mrf.mxu1 }
 0x3ff   :  { %v1056_v14 = vmul.f32 0.088388346, %v1050_v5  ;;  %v2558_v5 = vld [vmem:[#allocation8 + $0x60] ss:$8 sps:$4 sm:$0xff]  }
 0x400   :  { %v1873_v16 = vpop.f32.mrf.mxu1 }
 0x401   :  { %v1057_v31 = vadd.f32 %v1056_v14, %v2424_v21  ;;  %v2564_v14 = vld [vmem:[#allocation8 + $0x50] ss:$8 sps:$4 sm:$0xff]  }
 0x402   :  { %v1053_v18 = vpop.f32.mrf.mxu1 }
 0x403   :  { %v1058_v20 = vsel %vm942_vm2, %v1057_v31, -inf }
 0x404   :  { %1059 = vmax.xlane.f32.xlu0 %v1058_v20  ;;  %v1874_v22 = vpop.f32.mrf.mxu1 }
 0x41a   :  { %1381 = vrot.lane.b32.xlu0 %v2393_v27, %s2294_s4 }
 0x48d   :  { %v1060_v23 = vpop.xlane.xlu0 %1059 }
 0x48e   :  { %v1061_v24 = vsub.f32 %v1057_v31, %v1060_v23 }
 0x490   :  { %v1062_v25 = vmul.f32 1.442695, %v1061_v24 }
 0x491   :  { %v1382_v50 = vpop.permute.xlu0 %1381 }
 0x492   :  { %2117 = vpow2.f32 %v1062_v25  ;;  %v1383_v51 = vmul.f32 %v1382_v50, %v2409_v61  ;;  %v2576_v50 = vld [vmem:[#allocation8 + $0x44] ss:$8 sps:$4 sm:$0xff]  }
 0x494   :  { %v1384_v54 = vadd.f32 %v1383_v51, %v1380_v52  ;;  %v2578_v51 = vld [vmem:[#allocation8 + $0x40] ss:$8 sps:$4 sm:$0xff]   ;;  %v2582_v52 = vld [vmem:[#allocation8 + $0x30] ss:$8 sps:$4 sm:$0xff]  }
 0x496   :  { %v1386_v63 = vpack.c.bf16 %v1384_v54, %v1384_v54  ;;  %v2586_v54 = vld [vmem:[#allocation8 + $0x24] ss:$8 sps:$4 sm:$0xff]  }
 0x49f   :  { %v2118_v26 = vpop.eup %2117 }
 0x4a0   :  { %v1064_v6 = vsel %vm942_vm2, %v2118_v26, 0.0  ;;  %v1067_v33 = vpack.c.bf16 %v2118_v26, %v2118_v26 }
 0x4a1   :  { %1065 = vadd.xlane.f32.xlu1 %v1064_v6 }
 0x4a2   :  { %1878 = vmatmul.mubr.msk.bf16.vlgmr.msra.gmra.mxu1 %vm942_vm2, %v1067_v33 }
 0x4a3   :  { %1199 = vmatpush1.bf16.msra.mxu1 %v2486_v36  ;;  %1230 = vmatprep.mubr.bf16.mxu1 %v2297_v19 }
 0x4a4   :  { %1200 = vmatprep.subr.bf16.mxu1 %v2490_v38 }
 0x4a7   :  { %1201 = vmatpush1.bf16.msra.mxu1 %v2494_v15 }
 0x4a8   :  { %1202 = vmatprep.subr.bf16.mxu1 %v2497_v29 }
 0x4ab   :  { %1203 = vmatpush1.bf16.msra.mxu1 %v2500_v17 }
 0x4ac   :  { %1204 = vmatprep.subr.bf16.mxu1 %v2503_v30 }
 0x4af   :  { %1205 = vmatpush1.bf16.msra.mxu1 %v2506_v39 }
 0x4b0   :  { %1206 = vmatprep.subr.bf16.mxu1 %v2509_v40 }
 0x4b2   :  { %1376 = vrot.lane.b32.xlu1 %v2403_v32, %s2294_s4  ;;  %v2552_v32 = vld [vmem:[#allocation8 + $0x74] ss:$8 sps:$4 sm:$0xff]  }
 0x4b3   :  { %1207 = vmatpush1.bf16.msra.mxu1 %v2512_v41  ;;  %1319 = vmatprep.subr.bf16.mxu0 %v2552_v32 }
 0x4b4   :  { %1208 = vmatprep.subr.bf16.mxu1 %v2515_v42  ;;  %1320 = vmatpush1.bf16.msra.mxu0 %v2550_v8 }
 0x4b5   :  { %1321 = vmatprep.subr.bf16.mxu0 %v2554_v12 }
 0x4b6   :  { %1495 = vrot.lane.b32.xlu1 %v2476_v34, %s2294_s4 }
 0x4b7   :  { %1209 = vmatpush1.bf16.msra.mxu1 %v2518_v43 }
 0x4b8   :  { %1210 = vmatprep.subr.bf16.mxu1 %v2521_v44  ;;  %1322 = vmatpush1.bf16.msra.mxu0 %v2558_v5 }
 0x4ba   :  { %1490 = vrot.lane.b32.xlu1 %v2482_v35, %s2294_s4 }
 0x4bb   :  { %1211 = vmatpush1.bf16.msra.mxu1 %v2524_v45 }
 0x4bc   :  { %1212 = vmatprep.subr.bf16.mxu1 %v2528_v46 }
 0x4bf   :  { %1213 = vmatpush1.bf16.msra.mxu1 %v2530_v47 }
 0x4c0   :  { %1881 = vmatprep.subr.bf16.mxu1 %v2293_v11 }
 0x52a   :  { %v1066_v9 = vpop.xlane.xlu1 %1065 }
 0x52b   :  { %2119 = vrcp.f32 %v1066_v9  ;;  %v949_v9 = vsel %vm942_vm2, %v2451_v57, 0.0  ;;  %v2590_v57 = vld [vmem:[#allocation8 + $0x20] ss:$8 sps:$4 sm:$0xff]  }
 0x52e   :  { %v1377_v55 = vpop.permute.xlu1 %1376 }
 0x52f   :  { %v1378_v60 = vmul.f32 %v1377_v55, %v2409_v61  ;;  %v2593_v55 = vld [vmem:[#allocation8 + $0x14] ss:$8 sps:$4 sm:$0xff]  }
 0x531   :  { %v1379_v27 = vadd.f32 %v1378_v60, %v1375_v1 }
 0x532   :  { %v1496_v1 = vpop.permute.xlu1 %1495 }
 0x533   :  { %v1385_v4 = vpack.c.bf16 %v1379_v27, %v1379_v27  ;;  %v1494_v27 = vmul.f32 %v2398_v28, %v2476_v34 }
 0x538   :  { %v2120_v53 = vpop.eup %2119 }
 0x562   :  { %v1109_v56 = vpop.f32.mrf.mxu1 }
 0x563   :  { %v1116_v58 = vmul.f32 %v2120_v53, %v1109_v56  ;;  %v2584_v53 = vld [vmem:[#allocation8 + $0x34] ss:$8 sps:$4 sm:$0xff]   ;;  %v2596_v56 = vld [vmem:[#allocation8 + $0x10] ss:$8 sps:$4 sm:$0xff]  }
 0x564   :  { %v1879_v59 = vpop.f32.mrf.mxu1 }
 0x565   :  { %v1117_v62 = vpack.c.bf16 %v1116_v58, %v1116_v58  ;;  %v2599_v58 = vld [vmem:[#allocation8 + $0x4] ss:$8 sps:$4 sm:$0xff]   ;;  %v2602_v59 = vld [vmem:[#allocation8] ss:$8 sps:$4 sm:$0xff]  }
 0x566   :  { %v1112_v0 = vpop.f32.mrf.mxu1 }
 0x567   :  { %1231 = vmatmul.mubr.bf16.vlgmr.msra.gmra.mxu1 %v1117_v62 }
 0x568   :  { %1882 = vmatpush3.bf16.xpose.msra.mxu1 %v1386_v63  ;;  %v1880_v2 = vpop.f32.mrf.mxu1  ;;  %1883 = vmatprep.mubr.msk.bf16.mxu1 %vm2295_vm0, %v2293_v11 }
 0x569   :  { %1887 = vmatprep.subr.bf16.mxu1 %v2293_v11  ;;  %v1497_v2 = vmul.f32 %v1496_v1, %v2409_v61 }
 0x56f   :  { %1884 = vmatmul.mubr.bf16.vlgmr.msra.gmra.mxu1 %v1385_v4  ;;  %v1498_v4 = vadd.f32 %v1497_v2, %v1494_v27 }
 0x570   :  { %1888 = vmatpush3.bf16.msra.mxu1 %v2443_v48  ;;  %1889 = vmatprep.mubr.msk.bf16.mxu1 %vm2295_vm0, %v2293_v11  ;;  %v2561_v48 = vld [vmem:[#allocation8 + $0x54] ss:$8 sps:$4 sm:$0xff]  }
 0x571   :  { %1893 = vmatprep.subr.bf16.mxu1 %v2293_v11  ;;  %1323 = vmatprep.subr.bf16.mxu0 %v2561_v48 }
 0x572   :  { %1324 = vmatpush1.bf16.msra.mxu0 %v2564_v14 }
 0x573   :  { %1325 = vmatprep.subr.bf16.mxu0 %v2576_v50 }
 0x576   :  { %1326 = vmatpush1.bf16.msra.mxu0 %v2578_v51 }
 0x577   :  { %1327 = vmatprep.subr.bf16.mxu0 %v2584_v53 }
 0x57a   :  { %1328 = vmatpush1.bf16.msra.mxu0 %v2582_v52 }
 0x57b   :  { %1329 = vmatprep.subr.bf16.mxu0 %v2586_v54 }
 0x57e   :  { %1330 = vmatpush1.bf16.msra.mxu0 %v2590_v57 }
 0x57f   :  { %1331 = vmatprep.subr.bf16.mxu0 %v2593_v55 }
 0x582   :  { %1332 = vmatpush1.bf16.msra.mxu0 %v2596_v56 }
 0x583   :  { %1333 = vmatprep.subr.bf16.mxu0 %v2599_v58 }
 0x586   :  { %1334 = vmatpush1.bf16.msra.mxu0 %v2602_v59 }
 0x587   :  { %1603 = vmatprep.subr.bf16.mxu0 %v2488_v37 }
 0x627   :  { %v2568_v16 = vpop.f32.mrf.mxu1 }
 0x629   :  { %v2570_v31 = vpop.f32.mrf.mxu1 }
 0x62b   :  { %v1236_v18 = vpop.f32.mrf.mxu1 }
 0x62c   :  { %v1491_v18 = vpop.permute.xlu1 %1490 }
 0x62d   :  { %v1237_v20 = vpop.f32.mrf.mxu1 }
 0x62f   :  { %v1421_v22 = vpop.f32.mrf.mxu1 }
 0x630   :  { %v1427_v23 = vmul.f32 0.088388346, %v1421_v22 }
 0x631   :  { %v1885_v24 = vpop.f32.mrf.mxu1 }
 0x632   :  { %v1428_v25 = vadd.f32 %v1427_v23, %v2424_v21  ;;  %v1492_v23 = vmul.f32 %v1491_v18, %v2409_v61 }
 0x633   :  { %v1424_v26 = vpop.f32.mrf.mxu1 }
 0x634   :  { %v1429_v6 = vsel %vm942_vm2, %v1428_v25, -inf }
 0x635   :  { %1430 = vmax.xlane.f32.xlu0 %v1429_v6  ;;  %v1886_v33 = vpop.f32.mrf.mxu1  ;;  %v1489_v6 = vmul.f32 %v2398_v28, %v2482_v35 }
 0x637   :  { %v1493_v33 = vadd.f32 %v1492_v23, %v1489_v6 }
 0x639   :  { %950 = vadd.xlane.f32.xlu0 %v949_v9  ;;  %v1499_v61 = vpack.c.bf16 %v1493_v33, %v1493_v33 }
 0x6be   :  { %v1431_v60 = vpop.xlane.xlu0 %1430 }
 0x6bf   :  { %v1432_v62 = vsub.f32 %v1428_v25, %v1431_v60  ;;  %v1500_v25 = vpack.c.bf16 %v1498_v4, %v1498_v4 }
 0x6c1   :  { %v1433_v63 = vmul.f32 1.442695, %v1432_v62 }
 0x6c2   :  { %v951_v0 = vpop.xlane.xlu0 %950 }
 0x6c3   :  { %2121 = vpow2.f32 %v1433_v63 }
 0x6c4   :  { %2123 = vrcp.f32 %v951_v0 }
 0x6d0   :  { %v2122_v20 = vpop.eup %2121 }
 0x6d1   :  { %v2124_v22 = vpop.eup %2123  ;;  %v1435_v37 = vsel %vm942_vm2, %v2122_v20, 0.0  ;;  %v1438_v24 = vpack.c.bf16 %v2122_v20, %v2122_v20 }
 0x6d2   :  { %1436 = vadd.xlane.f32.xlu0 %v1435_v37  ;;  %v1002_v26 = vmul.f32 %v2124_v22, %v2464_v3 }
 0x6d3   :  { %1890 = vmatmul.mubr.msk.bf16.vlgmr.msra.gmra.mxu1 %vm942_vm2, %v1438_v24 }
 0x6d4   :  { %1894 = vmatpush3.bf16.xpose.msra.mxu1 %v1500_v25  ;;  %v1003_v34 = vpack.c.bf16 %v1002_v26, %v1002_v26  ;;  %1895 = vmatprep.mubr.msk.bf16.mxu1 %vm2295_vm0, %v2293_v11 }
 0x6d5   :  { %1899 = vmatprep.subr.bf16.mxu1 %v2293_v11 }
 0x6d6   :  { %1352 = vmatmul.mubr.bf16.vlgmr.msra.gmra.mxu0 %v1003_v34 }
 0x6d7   :  { %1604 = vmatpush1.bf16.msra.mxu0 %v2486_v36  ;;  %1635 = vmatprep.mubr.bf16.mxu0 %v2297_v19 }
 0x6d8   :  { %1605 = vmatprep.subr.bf16.mxu0 %v2490_v38 }
 0x6db   :  { %1896 = vmatmul.mubr.bf16.vlgmr.msra.gmra.mxu1 %v1499_v61  ;;  %1606 = vmatpush1.bf16.msra.mxu0 %v2494_v15 }
 0x6dc   :  { %1900 = vmatpush3.bf16.msra.mxu1 %v2447_v49  ;;  %1901 = vmatprep.mubr.msk.bf16.mxu1 %vm2295_vm0, %v2293_v11  ;;  %v881_v11 = vld [vmem:[#allocation10] sm:$0x3] }
 0x6dd   :  { %1644 = vmatprep.subr.bf16.mxu1 %v2552_v32  ;;  %1607 = vmatprep.subr.bf16.mxu0 %v2497_v29  ;;  %v2641_v49 = vrot.slane %v881_v11, %v210_v10  ;;  %v2646_v38 = vrot.slane %v881_v11, %v214_v13 }
 0x6df   :  { %1608 = vmatpush1.bf16.msra.mxu0 %v2500_v17 }
 0x6e0   :  { %1609 = vmatprep.subr.bf16.mxu0 %v2503_v30 }
 0x6e3   :  { %1610 = vmatpush1.bf16.msra.mxu0 %v2506_v39 }
 0x6e4   :  { %1611 = vmatprep.subr.bf16.mxu0 %v2509_v40 }
 0x6e7   :  { %1612 = vmatpush1.bf16.msra.mxu0 %v2512_v41 }
 0x6e8   :  { %1613 = vmatprep.subr.bf16.mxu0 %v2515_v42 }
 0x6eb   :  { %1614 = vmatpush1.bf16.msra.mxu0 %v2518_v43 }
 0x6ec   :  { %1615 = vmatprep.subr.bf16.mxu0 %v2521_v44 }
 0x6ef   :  { %1616 = vmatpush1.bf16.msra.mxu0 %v2524_v45 }
 0x6f0   :  { %1617 = vmatprep.subr.bf16.mxu0 %v2528_v46 }
 0x6f3   :  { %1618 = vmatpush1.bf16.msra.mxu0 %v2530_v47 }
 0x793   :  { %v1480_v28 = vpop.f32.mrf.mxu1 }
 0x795   :  { %v1891_v3 = vpop.f32.mrf.mxu1 }
 0x796   :  { %v1353_v35 = vpop.f32.mrf.mxu0 }
 0x797   :  { %v1354_v36 = vadd.f32 %v1353_v35, %v2568_v16  ;;  %v1483_v15 = vpop.f32.mrf.mxu1 }
 0x798   :  { %v1355_v29 = vpop.f32.mrf.mxu0 }
 0x799   :  { %v1371_v17 = vadd.f32 %v2641_v49, %v1354_v36  ;;  %v1356_v30 = vadd.f32 %v1355_v29, %v2570_v31  ;;  %v1892_v39 = vpop.f32.mrf.mxu1 }
 0x79a   :  { %v1357_v40 = vpop.f32.mrf.mxu0 }
 0x79b   :  { %1373 = vst [vmem:[#allocation13] sm:$0xff] %v1371_v17  ;;  %v1372_v10 = vadd.f32 %v2646_v38, %v1356_v30  ;;  %v1535_v41 = vpop.f32.mrf.mxu1 }
 0x79c   :  { %v1358_v42 = vpop.f32.mrf.mxu0  ;;  %v1541_v43 = vmul.f32 0.088388346, %v1535_v41 }
 0x79d   :  { %1374 = vst [vmem:[#allocation13 + $0x8] sm:$0xff] %v1372_v10  ;;  %v1897_v44 = vpop.f32.mrf.mxu1 }
 0x79e   :  { %v1542_v7 = vadd.f32 %v1541_v43, %v2424_v21  ;;  %v1437_v21 = vpop.xlane.xlu0 %1436 }
 0x79f   :  { %v1538_v13 = vpop.f32.mrf.mxu1 }
 0x7a0   :  { %v1543_v45 = vsel %vm942_vm2, %v1542_v7, -inf }
 0x7a1   :  { %1544 = vmax.xlane.f32.xlu1 %v1543_v45  ;;  %v1898_v46 = vpop.f32.mrf.mxu1 }
 0x82a   :  { %v1545_v47 = vpop.xlane.xlu1 %1544 }
 0x82b   :  { %v1546_v32 = vsub.f32 %v1542_v7, %v1545_v47 }
 0x82d   :  { %v1547_v16 = vmul.f32 1.442695, %v1546_v32 }
 0x82f   :  { %2125 = vpow2.f32 %v1547_v16 }
 0x830   :  { %2127 = vrcp.f32 %v1437_v21 }
 0x83c   :  { %v2126_v31 = vpop.eup %2125 }
 0x83d   :  { %v1549_v9 = vsel %vm942_vm2, %v2126_v31, 0.0  ;;  %v1552_v60 = vpack.c.bf16 %v2126_v31, %v2126_v31 }
 0x83e   :  { %1550 = vadd.xlane.f32.xlu0 %v1549_v9 }
 0x83f   :  { %1902 = vmatmul.mubr.msk.bf16.vlgmr.msra.gmra.mxu1 %vm942_vm2, %v1552_v60 }
 0x840   :  { %1645 = vmatpush1.bf16.msra.mxu1 %v2550_v8  ;;  %1676 = vmatprep.mubr.bf16.mxu1 %v2297_v19  ;;  %v2128_v19 = vpop.eup %2127 }
 0x841   :  { %1646 = vmatprep.subr.bf16.mxu1 %v2554_v12  ;;  %v1487_v8 = vmul.f32 %v2128_v19, %v1480_v28 }
 0x843   :  { %v1488_v12 = vpack.c.bf16 %v1487_v8, %v1487_v8 }
 0x844   :  { %1647 = vmatpush1.bf16.msra.mxu1 %v2558_v5 }
 0x845   :  { %1648 = vmatprep.subr.bf16.mxu1 %v2561_v48 }
 0x848   :  { %1649 = vmatpush1.bf16.msra.mxu1 %v2564_v14 }
 0x849   :  { %1650 = vmatprep.subr.bf16.mxu1 %v2576_v50 }
 0x84c   :  { %1651 = vmatpush1.bf16.msra.mxu1 %v2578_v51 }
 0x84d   :  { %1652 = vmatprep.subr.bf16.mxu1 %v2584_v53 }
 0x850   :  { %1653 = vmatpush1.bf16.msra.mxu1 %v2582_v52 }
 0x851   :  { %1654 = vmatprep.subr.bf16.mxu1 %v2586_v54 }
 0x854   :  { %1655 = vmatpush1.bf16.msra.mxu1 %v2590_v57 }
 0x855   :  { %1656 = vmatprep.subr.bf16.mxu1 %v2593_v55 }
 0x858   :  { %1657 = vmatpush1.bf16.msra.mxu1 %v2596_v56 }
 0x859   :  { %1658 = vmatprep.subr.bf16.mxu1 %v2599_v58 }
 0x85c   :  { %1659 = vmatpush1.bf16.msra.mxu1 %v2602_v59 }
 0x85f   :  { %1677 = vmatmul.mubr.bf16.vlgmr.msra.gmra.mxu1 %v1488_v12 }
 0x8c7   :  { %v1551_v5 = vpop.xlane.xlu0 %1550 }
 0x8c8   :  { %2129 = vrcp.f32 %v1551_v5 }
 0x8d5   :  { %v2130_v48 = vpop.eup %2129 }
 0x8ff   :  { %v1594_v14 = vpop.f32.mrf.mxu1 }
 0x900   :  { %v1601_v50 = vmul.f32 %v2130_v48, %v1594_v14 }
 0x901   :  { %v1903_v51 = vpop.f32.mrf.mxu1 }
 0x902   :  { %v1602_v52 = vpack.c.bf16 %v1601_v50, %v1601_v50 }
 0x903   :  { %v1597_v53 = vpop.f32.mrf.mxu1 }
 0x904   :  { %1636 = vmatmul.mubr.bf16.vlgmr.msra.gmra.mxu0 %v1602_v52 }
 0x905   :  { %v1904_v54 = vpop.f32.mrf.mxu1 }
 0x91f   :  { %v1678_v57 = vpop.f32.mrf.mxu1 }
 0x921   :  { %v1680_v55 = vpop.f32.mrf.mxu1 }
 0x923   :  { %v1682_v56 = vpop.f32.mrf.mxu1 }
 0x925   :  { %v1683_v62 = vpop.f32.mrf.mxu1 }
 0x9c4   :  { %v1637_v63 = vpop.f32.mrf.mxu0 }
 0x9c5   :  { %v1679_v58 = vadd.f32 %v1678_v57, %v1637_v63 }
 0x9c6   :  { %v1639_v0 = vpop.f32.mrf.mxu0 }
 0x9c7   :  { %v1685_v59 = vadd.f32 %v1679_v58, %v2641_v49  ;;  %v1681_v1 = vadd.f32 %v1680_v55, %v1639_v0 }
 0x9c8   :  { %v1641_v2 = vpop.f32.mrf.mxu0 }
 0x9c9   :  { %1687 = vst [vmem:[#allocation13 + $0x10] sm:$0xff] %v1685_v59  ;;  %v1686_v27 = vadd.f32 %v1681_v1, %v2646_v38 }
 0x9ca   :  { %v1642_v4 = vpop.f32.mrf.mxu0 }
 0x9cb   :  { %1688 = vst [vmem:[#allocation13 + $0x18] sm:$0xff] %v1686_v27 }
 0x9cc   :  { %2262 = shalt.err (!%p2259_p6)
}
 0x9cd   :  { %1700 = dma.vmem_to_hbm [thread:$0]  %s1695_s11, 512, %s2686_s7, [#allocation4], %s2288_s17, %s2288_s17, %s2289_s18  }
 0x9ce   :  { %2279 = dma.done.wait [#allocation4], 512  }
 0x9cf   :  { %2280 = vsyncadd [#allocation4], 4294966784 }
 0x9d0   :  { %1704 = vsyncpa [#allocation3], 1 }
 0x9d1   :  { %1705 = vsyncpa [#allocation6], 1 }
 0x9d2   :  { %1706 = vsyncpa [#allocation9], 1 }
 0x9d3   :  { %1707 = vsyncpa [#allocation12], 1 }
 0x9d4   :  { %1708 = vsyncpa [#allocation4], 1 }

</bundles_post_ra>
